<compile_context>
chip_gen: v7x
topology: tpu7x:2x2x1
jax: 0.10.0
libtpu: 0.0.40
codegen_flags: <defaults>
</compile_context>

<pallas_src>
import functools

import jax
import jax.numpy as jnp
from jax.experimental import pallas as pl
from jax.experimental.pallas import tpu as pltpu


def _sigmoid(v):
    return 1.0 / (1.0 + jnp.exp(-v))


# --------------------------- in-kernel building blocks ----------------------

def _conv3x3_rep_flat(x, w9, b, W, relu):
    """ReplicationPad2d(1) + Conv2d(3x3) as a single im2col MXU matmul.

    x:   (H*W, Cin) f32 activations, image rows contiguous, W % 8 == 0.
    w9:  (9*Cin, Cout) bf16 weight, flattened in (ky, kx, cin) order.
    b:   (1, Cout) f32 bias.
    Returns (H*W, Cout) f32.
    """
    HW, Cin = x.shape
    # Replication-pad top/bottom image rows -> (HW + 2W, Cin), still f32.
    xp = jnp.concatenate([x[0:W], x, x[HW - W:HW]], axis=0)
    P = HW + 2 * W
    colp = jax.lax.broadcasted_iota(jnp.int32, (P, 1), 0) % W
    # Column-shifted, edge-replicated variants built ONCE (f32 selects; the
    # roll's wrap rows land on edge columns and are overwritten by the select)
    # and reused by all three row offsets.
    xl = jnp.where(colp == 0, xp, pltpu.roll(xp, shift=1 % P, axis=0))
    xr = jnp.where(colp == W - 1, xp, pltpu.roll(xp, shift=(P - 1) % P, axis=0))
    # Single bf16 cast per column variant (not per tap).
    xl = xl.astype(jnp.bfloat16)
    xc = xp.astype(jnp.bfloat16)
    xr = xr.astype(jnp.bfloat16)
    taps = []
    for ky in range(3):                       # row offset ky - 1
        base = ky * W                         # 8-aligned slice start
        for src in (xl, xc, xr):              # column offset -1, 0, +1
            taps.append(src[base:base + HW, :])
    patch = jnp.concatenate(taps, axis=1)     # (HW, 9*Cin) bf16
    acc = jnp.dot(patch, w9, preferred_element_type=jnp.float32) + b
    if relu:
        acc = jnp.maximum(acc, 0.0)
    return acc


def _spatial_attn_logit(cr, ws, W):
    """7x7 zero-padded conv over [mean_C, max_C] as one im2col matmul.

    cr: (HW, C) f32.  ws: (98, 1) bf16 flattened in (ky, kx, chan) order.
    Returns (HW, 1) f32 logit.
    """
    HW = cr.shape[0]
    am = jnp.concatenate([jnp.mean(cr, axis=1, keepdims=True),
                          jnp.max(cr, axis=1, keepdims=True)], axis=1)   # (HW, 2)
    z = jnp.zeros((3 * W, 2), jnp.float32)
    mp = jnp.concatenate([z, am, z], axis=0)                             # (P, 2)
    P = HW + 6 * W
    colp = jax.lax.broadcasted_iota(jnp.int32, (P, 1), 0) % W
    cols = []
    for dx in range(-3, 4):                    # column offset
        if dx == 0:
            s = mp
        else:
            s = pltpu.roll(mp, shift=(-dx) % P, axis=0)
            if dx > 0:
                s = jnp.where(colp >= W - dx, jnp.zeros_like(s), s)
            else:
                s = jnp.where(colp < -dx, jnp.zeros_like(s), s)
        cols.append(s)
    mcol = jnp.concatenate(cols, axis=1).astype(jnp.bfloat16)            # (P, 14)
    taps = [mcol[dy * W:dy * W + HW, :] for dy in range(7)]              # aligned
    patch = jnp.concatenate(taps, axis=1)                                # (HW, 98)
    return jnp.dot(patch, ws, preferred_element_type=jnp.float32)        # (HW, 1)


def _residual_block_flat(x, w9, b, wa1, wa2, ws, W):
    """CBAM residual block: conv3x3+ReLU -> channel attn -> spatial attn."""
    rf = _conv3x3_rep_flat(x, w9, b, W, relu=True)                       # (HW, C)
    # Channel attention: avg & max pooled over HW, shared MLP evaluated once
    # on a stacked (2, C) tile.
    pooled = jnp.concatenate([jnp.mean(rf, axis=0, keepdims=True),
                              jnp.max(rf, axis=0, keepdims=True)], axis=0)
    hmid = jnp.maximum(jnp.dot(pooled.astype(jnp.bfloat16), wa1,
                               preferred_element_type=jnp.float32), 0.0)
    mlp = jnp.dot(hmid.astype(jnp.bfloat16), wa2,
                  preferred_element_type=jnp.float32)                    # (2, C)
    ca = _sigmoid(mlp[0:1, :] + mlp[1:2, :])                             # (1, C)
    cr = rf * ca
    sa = _sigmoid(_spatial_attn_logit(cr, ws, W))                        # (HW, 1)
    return cr * sa


# --------------------------------- kernels ----------------------------------

def _encoder_kernel(land_ref, res_ref,
                    fw1, fb1, fw2, fb2, fw3, fb3,
                    rw1, rb1, rw2, rb2, rw3, rb3,
                    o_ref, *, W):
    """Fused FEncoder(land subband) + REncoder(res subband) + sum."""
    def stack(x, layers):
        for w_ref, b_ref in layers:
            x = _conv3x3_rep_flat(x, w_ref[...], b_ref[...], W, relu=True)
        return x

    land = land_ref[0, 0]                                    # (HW, bands)
    res = res_ref[0, 0]
    o_ref[0, 0] = (stack(land, [(fw1, fb1), (fw2, fb2), (fw3, fb3)])
                   + stack(res, [(rw1, rb1), (rw2, rb2), (rw3, rb3)]))


def _tail_kernel(x_ref, land_ref,
                 d1w1, d1b1, d1w2, d1b2, d1w3, d1b3,
                 r1w, r1b, r1a1, r1a2, r1s,
                 r2w, r2b, r2a1, r2a2, r2s,
                 r3w, r3b, r3a1, r3a2, r3s,
                 d2w1, d2b1, d2w2, d2b2, d2w3, d2b3,
                 o_ref, *, W):
    """Decoder -> concat(land) -> RFEncoder (3 CBAM blocks) -> RFDecoder,
    all intermediates stay in VMEM; only the final (HW, bands) is written."""
    x = x_ref[0]                                             # (HW, 128)
    h = _conv3x3_rep_flat(x, d1w1[...], d1b1[...], W, relu=True)
    h = _conv3x3_rep_flat(h, d1w2[...], d1b2[...], W, relu=True)
    pre = jnp.dot(h.astype(jnp.bfloat16), d1w3[...],
                  preferred_element_type=jnp.float32) + d1b3[...]        # (HW, b)
    z = jnp.concatenate([pre, land_ref[0]], axis=1)                      # (HW, 2b)
    for (w, b, a1, a2, s) in ((r1w, r1b, r1a1, r1a2, r1s),
                              (r2w, r2b, r2a1, r2a2, r2s),
                              (r3w, r3b, r3a1, r3a2, r3s)):
        z = _residual_block_flat(z, w[...], b[...], a1[...], a2[...], s[...], W)
    h = _conv3x3_rep_flat(z, d2w1[...], d2b1[...], W, relu=True)
    h = _conv3x3_rep_flat(h, d2w2[...], d2b2[...], W, relu=True)
    o_ref[0] = jnp.dot(h.astype(jnp.bfloat16), d2w3[...],
                       preferred_element_type=jnp.float32) + d2b3[...]   # (HW, b)


# ----------------------------- pallas_call wrappers --------------------------

_VMEM_LIMIT = 48 * 1024 * 1024


def encoder_apply(land_sub, res_sub, fenc, renc, Wh):
    """land_sub/res_sub: (N, 4, HhWh, bands) -> (N, 4, HhWh, 128)."""
    N, S, HW, C = land_sub.shape
    COUT = fenc[-1][1].shape[-1]
    args, specs = [], []
    for (w, b) in list(fenc) + list(renc):
        args += [w, b]
        specs += [pl.BlockSpec(w.shape, lambda n, s: (0, 0)),
                  pl.BlockSpec(b.shape, lambda n, s: (0, 0))]
    sub_spec = pl.BlockSpec((1, 1, HW, C), lambda n, s: (n, s, 0, 0))
    return pl.pallas_call(
        functools.partial(_encoder_kernel, W=Wh),
        out_shape=jax.ShapeDtypeStruct((N, S, HW, COUT), jnp.float32),
        grid=(N, S),
        in_specs=[sub_spec, sub_spec] + specs,
        out_specs=pl.BlockSpec((1, 1, HW, COUT), lambda n, s: (n, s, 0, 0)),
        compiler_params=pltpu.CompilerParams(
            dimension_semantics=("parallel", "parallel"),
            vmem_limit_bytes=_VMEM_LIMIT),
    )(land_sub, res_sub, *args)


def tail_apply(feat, land_flat, dec, rfenc, rfdec, W):
    """feat: (N, HW, 128), land_flat: (N, HW, bands) -> (N, HW, bands)."""
    N, HW, CF = feat.shape
    bands = land_flat.shape[-1]
    (d1w1, d1b1), (d1w2, d1b2), (d1w3, d1b3) = dec
    (d2w1, d2b1), (d2w2, d2b2), (d2w3, d2b3) = rfdec
    weight_args = [d1w1, d1b1, d1w2, d1b2, d1w3, d1b3]
    for (wc, bc, wa1, wa2, ws) in rfenc:
        weight_args += [wc, bc, wa1, wa2, ws]
    weight_args += [d2w1, d2b1, d2w2, d2b2, d2w3, d2b3]
    wspecs = [pl.BlockSpec(a.shape, lambda n, _nd=a.ndim: (0,) * _nd)
              for a in weight_args]
    return pl.pallas_call(
        functools.partial(_tail_kernel, W=W),
        out_shape=jax.ShapeDtypeStruct((N, HW, bands), jnp.float32),
        grid=(N,),
        in_specs=[pl.BlockSpec((1, HW, CF), lambda n: (n, 0, 0)),
                  pl.BlockSpec((1, HW, bands), lambda n: (n, 0, 0))] + wspecs,
        out_specs=pl.BlockSpec((1, HW, bands), lambda n: (n, 0, 0)),
        compiler_params=pltpu.CompilerParams(
            dimension_semantics=("parallel",),
            vmem_limit_bytes=_VMEM_LIMIT),
    )(feat, land_flat, *weight_args)


# ------------------------------ plain-JAX glue -------------------------------

def dwt2_haar_subbands(x):
    """x: (N, H, W, C) -> (N, 4, H//2, W//2, C) subbands [LL, H1, H2, H3]."""
    N, H, W, C = x.shape
    xr = x.reshape(N, H // 2, 2, W // 2, 2, C)
    a = xr[:, :, 0, :, 0, :]
    b = xr[:, :, 0, :, 1, :]
    c = xr[:, :, 1, :, 0, :]
    d = xr[:, :, 1, :, 1, :]
    ll = (a + b + c + d) * 0.5
    h1 = (a + b - c - d) * 0.5
    h2 = (a - b + c - d) * 0.5
    h3 = (a - b - c + d) * 0.5
    return jnp.stack([ll, h1, h2, h3], axis=1)


def idwt2_haar_subbands(sub):
    """sub: (N, 4, Hh, Wh, C) subbands [LL, H1, H2, H3] -> (N, 2Hh, 2Wh, C)."""
    ll, h1, h2, h3 = sub[:, 0], sub[:, 1], sub[:, 2], sub[:, 3]
    a = (ll + h1 + h2 + h3) * 0.5
    b = (ll + h1 - h2 - h3) * 0.5
    c = (ll - h1 + h2 - h3) * 0.5
    d = (ll - h1 - h2 + h3) * 0.5
    N, Hh, Wh, C = ll.shape
    top = jnp.stack([a, b], axis=3)                 # (N, Hh, Wh, 2, C)
    bot = jnp.stack([c, d], axis=3)
    out = jnp.stack([top, bot], axis=2)             # (N, Hh, 2, Wh, 2, C)
    return out.reshape(N, 2 * Hh, 2 * Wh, C)


# -------------------------------- parameters ---------------------------------

def init_params(key, bands):
    keys = iter(jax.random.split(key, 64))
    nk = lambda: next(keys)

    def conv3(cin, cout):
        kw, kb = jax.random.split(nk())
        w = jax.random.normal(kw, (3, 3, cin, cout), jnp.float32) / ((9 * cin) ** 0.5)
        b = jax.random.normal(kb, (cout,), jnp.float32) * 0.01
        # pre-flattened im2col weight (ky, kx, cin) -> 9*cin rows
        return w.reshape(9 * cin, cout).astype(jnp.bfloat16), b.reshape(1, cout)

    enc_ch = [bands, 32, 64, 128]
    fenc = [conv3(ci, co) for ci, co in zip(enc_ch[:-1], enc_ch[1:])]
    renc = [conv3(ci, co) for ci, co in zip(enc_ch[:-1], enc_ch[1:])]

    def decoder():
        l1 = conv3(128, 64)
        l2 = conv3(64, 32)
        kw, kb = jax.random.split(nk())
        w3 = (jax.random.normal(kw, (32, bands), jnp.float32)
              / (32.0 ** 0.5)).astype(jnp.bfloat16)
        b3 = (jax.random.normal(kb, (bands,), jnp.float32) * 0.01).reshape(1, bands)
        return [l1, l2, (w3, b3)]

    dec, rfdec = decoder(), decoder()

    rf_ch = [2 * bands, 32, 64, 128]
    rfenc = []
    for ci, co in zip(rf_ch[:-1], rf_ch[1:]):
        wc, bc = conv3(ci, co)
        cr = co // 16
        wa1 = (jax.random.normal(nk(), (co, cr), jnp.float32)
               / co ** 0.5).astype(jnp.bfloat16)
        wa2 = (jax.random.normal(nk(), (cr, co), jnp.float32)
               / cr ** 0.5).astype(jnp.bfloat16)
        ws = (jax.random.normal(nk(), (7, 7, 2), jnp.float32) / (98.0 ** 0.5)
              ).reshape(98, 1).astype(jnp.bfloat16)     # (ky, kx, chan) order
        rfenc.append((wc, bc, wa1, wa2, ws))

    return dict(fenc=fenc, renc=renc, dec=dec, rfdec=rfdec, rfenc=rfenc)


# ---------------------------------- forward ----------------------------------

def fusion_net_2(params, modis_ref, modis_pre, land_ref):
    """Inputs/outputs NHWC float32. (Modis_ref is unused, as in the reference)."""
    del modis_ref
    N, H, W, bands = land_ref.shape
    # Flattened-shift edge masking requires lane/sublane-aligned widths:
    assert W % 16 == 0 and H % 2 == 0, "requires W % 16 == 0 (Wh % 8 == 0)"
    Hh, Wh = H // 2, W // 2
    res_data = modis_pre - land_ref

    land_sub = dwt2_haar_subbands(land_ref).reshape(N, 4, Hh * Wh, bands)
    res_sub = dwt2_haar_subbands(res_data).reshape(N, 4, Hh * Wh, bands)

    enc = encoder_apply(land_sub, res_sub, params["fenc"], params["renc"], Wh)
    feat = idwt2_haar_subbands(enc.reshape(N, 4, Hh, Wh, -1)).reshape(N, H * W, -1)

    out = tail_apply(feat, land_ref.reshape(N, H * W, bands),
                     params["dec"], params["rfenc"], params["rfdec"], W)
    return out.reshape(N, H, W, bands)


# ------------------------------------ main ------------------------------------

if __name__ == "__main__":
    bands, N, H, W = 4, 2, 16, 16

    k1, k2, k3 = jax.random.split(jax.random.PRNGKey(0), 3)
    # PyTorch-style NCHW inputs
    modis_ref = jax.random.normal(k1, (N, bands, H, W), jnp.float32)
    modis_pre = jax.random.normal(k2, (N, bands, H, W), jnp.float32)
    land_ref = jax.random.normal(k3, (N, bands, H, W), jnp.float32)

    params = init_params(jax.random.PRNGKey(42), bands)

    to_nhwc = lambda t: jnp.transpose(t, (0, 2, 3, 1))
    fwd = jax.jit(fusion_net_2)
    out_nhwc = fwd(params, to_nhwc(modis_ref), to_nhwc(modis_pre),
                   to_nhwc(land_ref))
    out = jnp.transpose(out_nhwc, (0, 3, 1, 2))                 # back to NCHW
    jax.block_until_ready(out)

    assert out.shape == (N, bands, H, W) and out.dtype == jnp.float32
    assert bool(jnp.all(jnp.isfinite(out)))
    print("KERNEL_OK")
</pallas_src>

<mosaic_0001>
module attributes {stable_mosaic.version = 11 : i64} {
  func.func @_encoder_kernel(%arg0: i32, %arg1: i32, %arg2: memref<1x1x64x4xf32, #tpu.memory_space<vmem>>, %arg3: memref<1x1x64x4xf32, #tpu.memory_space<vmem>>, %arg4: memref<36x32xbf16, #tpu.memory_space<vmem>>, %arg5: memref<1x32xf32, #tpu.memory_space<vmem>>, %arg6: memref<288x64xbf16, #tpu.memory_space<vmem>>, %arg7: memref<1x64xf32, #tpu.memory_space<vmem>>, %arg8: memref<576x128xbf16, #tpu.memory_space<vmem>>, %arg9: memref<1x128xf32, #tpu.memory_space<vmem>>, %arg10: memref<36x32xbf16, #tpu.memory_space<vmem>>, %arg11: memref<1x32xf32, #tpu.memory_space<vmem>>, %arg12: memref<288x64xbf16, #tpu.memory_space<vmem>>, %arg13: memref<1x64xf32, #tpu.memory_space<vmem>>, %arg14: memref<576x128xbf16, #tpu.memory_space<vmem>>, %arg15: memref<1x128xf32, #tpu.memory_space<vmem>>, %arg16: memref<1x1x64x128xf32, #tpu.memory_space<vmem>>) attributes {dimension_semantics = [#tpu.dimension_semantics<parallel>, #tpu.dimension_semantics<parallel>], iteration_bounds = array<i64: 2, 4>, scalar_prefetch = 0 : i64, scratch_operands = 0 : i64, tpu.core_type = #tpu.core_type<tc>, window_params = [{transform_indices = @transform_0, window_bounds = array<i64: 1, 1, 64, 4>}, {transform_indices = @transform_1, window_bounds = array<i64: 1, 1, 64, 4>}, {pipeline_mode = #tpu.pipeline_mode<synchronous>, transform_indices = @transform_2, window_bounds = array<i64: 36, 32>}, {pipeline_mode = #tpu.pipeline_mode<synchronous>, transform_indices = @transform_3, window_bounds = array<i64: 1, 32>}, {pipeline_mode = #tpu.pipeline_mode<synchronous>, transform_indices = @transform_4, window_bounds = array<i64: 288, 64>}, {pipeline_mode = #tpu.pipeline_mode<synchronous>, transform_indices = @transform_5, window_bounds = array<i64: 1, 64>}, {pipeline_mode = #tpu.pipeline_mode<synchronous>, transform_indices = @transform_6, window_bounds = array<i64: 576, 128>}, {pipeline_mode = #tpu.pipeline_mode<synchronous>, transform_indices = @transform_7, window_bounds = array<i64: 1, 128>}, {pipeline_mode = #tpu.pipeline_mode<synchronous>, transform_indices = @transform_8, window_bounds = array<i64: 36, 32>}, {pipeline_mode = #tpu.pipeline_mode<synchronous>, transform_indices = @transform_9, window_bounds = array<i64: 1, 32>}, {pipeline_mode = #tpu.pipeline_mode<synchronous>, transform_indices = @transform_10, window_bounds = array<i64: 288, 64>}, {pipeline_mode = #tpu.pipeline_mode<synchronous>, transform_indices = @transform_11, window_bounds = array<i64: 1, 64>}, {pipeline_mode = #tpu.pipeline_mode<synchronous>, transform_indices = @transform_12, window_bounds = array<i64: 576, 128>}, {pipeline_mode = #tpu.pipeline_mode<synchronous>, transform_indices = @transform_13, window_bounds = array<i64: 1, 128>}, {transform_indices = @transform_14, window_bounds = array<i64: 1, 1, 64, 128>}]} {
    %c0 = arith.constant 0 : index
    %c0_0 = arith.constant 0 : index
    %c0_1 = arith.constant 0 : index
    %c0_2 = arith.constant 0 : index
    %0 = vector.load %arg2[%c0, %c0_0, %c0_1, %c0_2] : memref<1x1x64x4xf32, #tpu.memory_space<vmem>>, vector<1x1x64x4xf32>
    %1 = vector.shape_cast %0 : vector<1x1x64x4xf32> to vector<64x4xf32>
    %c0_3 = arith.constant 0 : index
    %c0_4 = arith.constant 0 : index
    %c0_5 = arith.constant 0 : index
    %c0_6 = arith.constant 0 : index
    %2 = vector.load %arg3[%c0_3, %c0_4, %c0_5, %c0_6] : memref<1x1x64x4xf32, #tpu.memory_space<vmem>>, vector<1x1x64x4xf32>
    %3 = vector.shape_cast %2 : vector<1x1x64x4xf32> to vector<64x4xf32>
    %c0_7 = arith.constant 0 : index
    %c0_8 = arith.constant 0 : index
    %4 = vector.load %arg4[%c0_7, %c0_8] : memref<36x32xbf16, #tpu.memory_space<vmem>>, vector<36x32xbf16>
    %c0_9 = arith.constant 0 : index
    %c0_10 = arith.constant 0 : index
    %5 = vector.load %arg5[%c0_9, %c0_10] : memref<1x32xf32, #tpu.memory_space<vmem>>, vector<1x32xf32>
    %6 = vector.extract_strided_slice %1 {offsets = [0, 0], sizes = [8, 4], strides = [1, 1]} : vector<64x4xf32> to vector<8x4xf32>
    %7 = vector.extract_strided_slice %1 {offsets = [56, 0], sizes = [8, 4], strides = [1, 1]} : vector<64x4xf32> to vector<8x4xf32>
    %8 = tpu.concatenate %6, %1, %7 in 0 : vector<8x4xf32>, vector<64x4xf32>, vector<8x4xf32> -> vector<80x4xf32>
    %9 = tpu.iota {dimensions = array<i32: 0>} : vector<80x1xi32>
    %c8_i32 = arith.constant 8 : i32
    %c0_i32 = arith.constant 0 : i32
    %10 = arith.cmpi eq, %c8_i32, %c0_i32 : i32
    %c1_i32 = arith.constant 1 : i32
    %11 = arith.select %10, %c1_i32, %c8_i32 : i32
    %12 = vector.broadcast %11 : i32 to vector<80x1xi32>
    %13 = arith.remsi %9, %12 : vector<80x1xi32>
    %c0_i32_11 = arith.constant 0 : i32
    %14 = vector.broadcast %c0_i32_11 : i32 to vector<80x1xi32>
    %15 = arith.cmpi ne, %13, %14 : vector<80x1xi32>
    %c0_i32_12 = arith.constant 0 : i32
    %16 = vector.broadcast %c0_i32_12 : i32 to vector<80x1xi32>
    %17 = arith.cmpi slt, %13, %16 : vector<80x1xi32>
    %c0_i32_13 = arith.constant 0 : i32
    %18 = arith.cmpi slt, %11, %c0_i32_13 : i32
    %19 = vector.broadcast %18 : i1 to vector<80x1xi1>
    %20 = vector.broadcast %19 : vector<80x1xi1> to vector<80x1xi1>
    %21 = arith.xori %17, %20 : vector<80x1xi1>
    %22 = arith.andi %21, %15 : vector<80x1xi1>
    %23 = vector.broadcast %11 : i32 to vector<80x1xi32>
    %24 = arith.addi %13, %23 : vector<80x1xi32>
    %25 = arith.select %22, %24, %13 : vector<80x1xi1>, vector<80x1xi32>
    %c0_i32_14 = arith.constant 0 : i32
    %26 = vector.broadcast %c0_i32_14 : i32 to vector<80x1xi32>
    %27 = arith.cmpi eq, %25, %26 : vector<80x1xi32>
    %c1_i32_15 = arith.constant 1 : i32
    %28 = tpu.dynamic_rotate %8 by %c1_i32_15 dim 0 : vector<80x4xf32>, i32 -> vector<80x4xf32>
    %29 = vector.shape_cast %27 : vector<80x1xi1> to vector<80x1xi1>
    %30 = vector.broadcast %29 : vector<80x1xi1> to vector<80x4xi1>
    %31 = arith.select %30, %8, %28 : vector<80x4xi1>, vector<80x4xf32>
    %c7_i32 = arith.constant 7 : i32
    %32 = vector.broadcast %c7_i32 : i32 to vector<80x1xi32>
    %33 = arith.cmpi eq, %25, %32 : vector<80x1xi32>
    %c79_i32 = arith.constant 79 : i32
    %34 = tpu.dynamic_rotate %8 by %c79_i32 dim 0 : vector<80x4xf32>, i32 -> vector<80x4xf32>
    %35 = vector.shape_cast %33 : vector<80x1xi1> to vector<80x1xi1>
    %36 = vector.broadcast %35 : vector<80x1xi1> to vector<80x4xi1>
    %37 = arith.select %36, %8, %34 : vector<80x4xi1>, vector<80x4xf32>
    %38 = arith.truncf %31 : vector<80x4xf32> to vector<80x4xbf16>
    %39 = arith.truncf %8 : vector<80x4xf32> to vector<80x4xbf16>
    %40 = arith.truncf %37 : vector<80x4xf32> to vector<80x4xbf16>
    %41 = vector.extract_strided_slice %38 {offsets = [0, 0], sizes = [64, 4], strides = [1, 1]} : vector<80x4xbf16> to vector<64x4xbf16>
    %42 = vector.extract_strided_slice %39 {offsets = [0, 0], sizes = [64, 4], strides = [1, 1]} : vector<80x4xbf16> to vector<64x4xbf16>
    %43 = vector.extract_strided_slice %40 {offsets = [0, 0], sizes = [64, 4], strides = [1, 1]} : vector<80x4xbf16> to vector<64x4xbf16>
    %44 = vector.extract_strided_slice %38 {offsets = [8, 0], sizes = [64, 4], strides = [1, 1]} : vector<80x4xbf16> to vector<64x4xbf16>
    %45 = vector.extract_strided_slice %39 {offsets = [8, 0], sizes = [64, 4], strides = [1, 1]} : vector<80x4xbf16> to vector<64x4xbf16>
    %46 = vector.extract_strided_slice %40 {offsets = [8, 0], sizes = [64, 4], strides = [1, 1]} : vector<80x4xbf16> to vector<64x4xbf16>
    %47 = vector.extract_strided_slice %38 {offsets = [16, 0], sizes = [64, 4], strides = [1, 1]} : vector<80x4xbf16> to vector<64x4xbf16>
    %48 = vector.extract_strided_slice %39 {offsets = [16, 0], sizes = [64, 4], strides = [1, 1]} : vector<80x4xbf16> to vector<64x4xbf16>
    %49 = vector.extract_strided_slice %40 {offsets = [16, 0], sizes = [64, 4], strides = [1, 1]} : vector<80x4xbf16> to vector<64x4xbf16>
    %50 = tpu.concatenate %41, %42, %43, %44, %45, %46, %47, %48, %49 in 1 : vector<64x4xbf16>, vector<64x4xbf16>, vector<64x4xbf16>, vector<64x4xbf16>, vector<64x4xbf16>, vector<64x4xbf16>, vector<64x4xbf16>, vector<64x4xbf16>, vector<64x4xbf16> -> vector<64x36xbf16>
    %cst = arith.constant dense<0.000000e+00> : vector<64x32xf32>
    %51 = tpu.matmul %50, %4, %cst {dimension_numbers = #tpu.dot_dimension_numbers<[1], [0], [0], [1], [0, 0, 1, 1], [], []>} : vector<64x36xbf16>, vector<36x32xbf16>, vector<64x32xf32> -> vector<64x32xf32>
    %52 = vector.broadcast %5 : vector<1x32xf32> to vector<64x32xf32>
    %53 = arith.addf %51, %52 : vector<64x32xf32>
    %cst_16 = arith.constant 0.000000e+00 : f32
    %54 = vector.broadcast %cst_16 : f32 to vector<64x32xf32>
    %55 = arith.maximumf %53, %54 : vector<64x32xf32>
    %c0_17 = arith.constant 0 : index
    %c0_18 = arith.constant 0 : index
    %56 = vector.load %arg6[%c0_17, %c0_18] : memref<288x64xbf16, #tpu.memory_space<vmem>>, vector<288x64xbf16>
    %c0_19 = arith.constant 0 : index
    %c0_20 = arith.constant 0 : index
    %57 = vector.load %arg7[%c0_19, %c0_20] : memref<1x64xf32, #tpu.memory_space<vmem>>, vector<1x64xf32>
    %58 = vector.extract_strided_slice %55 {offsets = [0, 0], sizes = [8, 32], strides = [1, 1]} : vector<64x32xf32> to vector<8x32xf32>
    %59 = vector.extract_strided_slice %55 {offsets = [56, 0], sizes = [8, 32], strides = [1, 1]} : vector<64x32xf32> to vector<8x32xf32>
    %60 = tpu.concatenate %58, %55, %59 in 0 : vector<8x32xf32>, vector<64x32xf32>, vector<8x32xf32> -> vector<80x32xf32>
    %61 = tpu.iota {dimensions = array<i32: 0>} : vector<80x1xi32>
    %c8_i32_21 = arith.constant 8 : i32
    %c0_i32_22 = arith.constant 0 : i32
    %62 = arith.cmpi eq, %c8_i32_21, %c0_i32_22 : i32
    %c1_i32_23 = arith.constant 1 : i32
    %63 = arith.select %62, %c1_i32_23, %c8_i32_21 : i32
    %64 = vector.broadcast %63 : i32 to vector<80x1xi32>
    %65 = arith.remsi %61, %64 : vector<80x1xi32>
    %c0_i32_24 = arith.constant 0 : i32
    %66 = vector.broadcast %c0_i32_24 : i32 to vector<80x1xi32>
    %67 = arith.cmpi ne, %65, %66 : vector<80x1xi32>
    %c0_i32_25 = arith.constant 0 : i32
    %68 = vector.broadcast %c0_i32_25 : i32 to vector<80x1xi32>
    %69 = arith.cmpi slt, %65, %68 : vector<80x1xi32>
    %c0_i32_26 = arith.constant 0 : i32
    %70 = arith.cmpi slt, %63, %c0_i32_26 : i32
    %71 = vector.broadcast %70 : i1 to vector<80x1xi1>
    %72 = vector.broadcast %71 : vector<80x1xi1> to vector<80x1xi1>
    %73 = arith.xori %69, %72 : vector<80x1xi1>
    %74 = arith.andi %73, %67 : vector<80x1xi1>
    %75 = vector.broadcast %63 : i32 to vector<80x1xi32>
    %76 = arith.addi %65, %75 : vector<80x1xi32>
    %77 = arith.select %74, %76, %65 : vector<80x1xi1>, vector<80x1xi32>
    %c0_i32_27 = arith.constant 0 : i32
    %78 = vector.broadcast %c0_i32_27 : i32 to vector<80x1xi32>
    %79 = arith.cmpi eq, %77, %78 : vector<80x1xi32>
    %c1_i32_28 = arith.constant 1 : i32
    %80 = tpu.dynamic_rotate %60 by %c1_i32_28 dim 0 : vector<80x32xf32>, i32 -> vector<80x32xf32>
    %81 = vector.shape_cast %79 : vector<80x1xi1> to vector<80x1xi1>
    %82 = vector.broadcast %81 : vector<80x1xi1> to vector<80x32xi1>
    %83 = arith.select %82, %60, %80 : vector<80x32xi1>, vector<80x32xf32>
    %c7_i32_29 = arith.constant 7 : i32
    %84 = vector.broadcast %c7_i32_29 : i32 to vector<80x1xi32>
    %85 = arith.cmpi eq, %77, %84 : vector<80x1xi32>
    %c79_i32_30 = arith.constant 79 : i32
    %86 = tpu.dynamic_rotate %60 by %c79_i32_30 dim 0 : vector<80x32xf32>, i32 -> vector<80x32xf32>
    %87 = vector.shape_cast %85 : vector<80x1xi1> to vector<80x1xi1>
    %88 = vector.broadcast %87 : vector<80x1xi1> to vector<80x32xi1>
    %89 = arith.select %88, %60, %86 : vector<80x32xi1>, vector<80x32xf32>
    %90 = arith.truncf %83 : vector<80x32xf32> to vector<80x32xbf16>
    %91 = arith.truncf %60 : vector<80x32xf32> to vector<80x32xbf16>
    %92 = arith.truncf %89 : vector<80x32xf32> to vector<80x32xbf16>
    %93 = vector.extract_strided_slice %90 {offsets = [0, 0], sizes = [64, 32], strides = [1, 1]} : vector<80x32xbf16> to vector<64x32xbf16>
    %94 = vector.extract_strided_slice %91 {offsets = [0, 0], sizes = [64, 32], strides = [1, 1]} : vector<80x32xbf16> to vector<64x32xbf16>
    %95 = vector.extract_strided_slice %92 {offsets = [0, 0], sizes = [64, 32], strides = [1, 1]} : vector<80x32xbf16> to vector<64x32xbf16>
    %96 = vector.extract_strided_slice %90 {offsets = [8, 0], sizes = [64, 32], strides = [1, 1]} : vector<80x32xbf16> to vector<64x32xbf16>
    %97 = vector.extract_strided_slice %91 {offsets = [8, 0], sizes = [64, 32], strides = [1, 1]} : vector<80x32xbf16> to vector<64x32xbf16>
    %98 = vector.extract_strided_slice %92 {offsets = [8, 0], sizes = [64, 32], strides = [1, 1]} : vector<80x32xbf16> to vector<64x32xbf16>
    %99 = vector.extract_strided_slice %90 {offsets = [16, 0], sizes = [64, 32], strides = [1, 1]} : vector<80x32xbf16> to vector<64x32xbf16>
    %100 = vector.extract_strided_slice %91 {offsets = [16, 0], sizes = [64, 32], strides = [1, 1]} : vector<80x32xbf16> to vector<64x32xbf16>
    %101 = vector.extract_strided_slice %92 {offsets = [16, 0], sizes = [64, 32], strides = [1, 1]} : vector<80x32xbf16> to vector<64x32xbf16>
    %102 = tpu.concatenate %93, %94, %95, %96, %97, %98, %99, %100, %101 in 1 : vector<64x32xbf16>, vector<64x32xbf16>, vector<64x32xbf16>, vector<64x32xbf16>, vector<64x32xbf16>, vector<64x32xbf16>, vector<64x32xbf16>, vector<64x32xbf16>, vector<64x32xbf16> -> vector<64x288xbf16>
    %cst_31 = arith.constant dense<0.000000e+00> : vector<64x64xf32>
    %103 = tpu.matmul %102, %56, %cst_31 {dimension_numbers = #tpu.dot_dimension_numbers<[1], [0], [0], [1], [0, 0, 1, 1], [], []>} : vector<64x288xbf16>, vector<288x64xbf16>, vector<64x64xf32> -> vector<64x64xf32>
    %104 = vector.broadcast %57 : vector<1x64xf32> to vector<64x64xf32>
    %105 = arith.addf %103, %104 : vector<64x64xf32>
    %cst_32 = arith.constant 0.000000e+00 : f32
    %106 = vector.broadcast %cst_32 : f32 to vector<64x64xf32>
    %107 = arith.maximumf %105, %106 : vector<64x64xf32>
    %c0_33 = arith.constant 0 : index
    %c0_34 = arith.constant 0 : index
    %108 = vector.load %arg8[%c0_33, %c0_34] : memref<576x128xbf16, #tpu.memory_space<vmem>>, vector<576x128xbf16>
    %c0_35 = arith.constant 0 : index
    %c0_36 = arith.constant 0 : index
    %109 = vector.load %arg9[%c0_35, %c0_36] : memref<1x128xf32, #tpu.memory_space<vmem>>, vector<1x128xf32>
    %110 = vector.extract_strided_slice %107 {offsets = [0, 0], sizes = [8, 64], strides = [1, 1]} : vector<64x64xf32> to vector<8x64xf32>
    %111 = vector.extract_strided_slice %107 {offsets = [56, 0], sizes = [8, 64], strides = [1, 1]} : vector<64x64xf32> to vector<8x64xf32>
    %112 = tpu.concatenate %110, %107, %111 in 0 : vector<8x64xf32>, vector<64x64xf32>, vector<8x64xf32> -> vector<80x64xf32>
    %113 = tpu.iota {dimensions = array<i32: 0>} : vector<80x1xi32>
    %c8_i32_37 = arith.constant 8 : i32
    %c0_i32_38 = arith.constant 0 : i32
    %114 = arith.cmpi eq, %c8_i32_37, %c0_i32_38 : i32
    %c1_i32_39 = arith.constant 1 : i32
    %115 = arith.select %114, %c1_i32_39, %c8_i32_37 : i32
    %116 = vector.broadcast %115 : i32 to vector<80x1xi32>
    %117 = arith.remsi %113, %116 : vector<80x1xi32>
    %c0_i32_40 = arith.constant 0 : i32
    %118 = vector.broadcast %c0_i32_40 : i32 to vector<80x1xi32>
    %119 = arith.cmpi ne, %117, %118 : vector<80x1xi32>
    %c0_i32_41 = arith.constant 0 : i32
    %120 = vector.broadcast %c0_i32_41 : i32 to vector<80x1xi32>
    %121 = arith.cmpi slt, %117, %120 : vector<80x1xi32>
    %c0_i32_42 = arith.constant 0 : i32
    %122 = arith.cmpi slt, %115, %c0_i32_42 : i32
    %123 = vector.broadcast %122 : i1 to vector<80x1xi1>
    %124 = vector.broadcast %123 : vector<80x1xi1> to vector<80x1xi1>
    %125 = arith.xori %121, %124 : vector<80x1xi1>
    %126 = arith.andi %125, %119 : vector<80x1xi1>
    %127 = vector.broadcast %115 : i32 to vector<80x1xi32>
    %128 = arith.addi %117, %127 : vector<80x1xi32>
    %129 = arith.select %126, %128, %117 : vector<80x1xi1>, vector<80x1xi32>
    %c0_i32_43 = arith.constant 0 : i32
    %130 = vector.broadcast %c0_i32_43 : i32 to vector<80x1xi32>
    %131 = arith.cmpi eq, %129, %130 : vector<80x1xi32>
    %c1_i32_44 = arith.constant 1 : i32
    %132 = tpu.dynamic_rotate %112 by %c1_i32_44 dim 0 : vector<80x64xf32>, i32 -> vector<80x64xf32>
    %133 = vector.shape_cast %131 : vector<80x1xi1> to vector<80x1xi1>
    %134 = vector.broadcast %133 : vector<80x1xi1> to vector<80x64xi1>
    %135 = arith.select %134, %112, %132 : vector<80x64xi1>, vector<80x64xf32>
    %c7_i32_45 = arith.constant 7 : i32
    %136 = vector.broadcast %c7_i32_45 : i32 to vector<80x1xi32>
    %137 = arith.cmpi eq, %129, %136 : vector<80x1xi32>
    %c79_i32_46 = arith.constant 79 : i32
    %138 = tpu.dynamic_rotate %112 by %c79_i32_46 dim 0 : vector<80x64xf32>, i32 -> vector<80x64xf32>
    %139 = vector.shape_cast %137 : vector<80x1xi1> to vector<80x1xi1>
    %140 = vector.broadcast %139 : vector<80x1xi1> to vector<80x64xi1>
    %141 = arith.select %140, %112, %138 : vector<80x64xi1>, vector<80x64xf32>
    %142 = arith.truncf %135 : vector<80x64xf32> to vector<80x64xbf16>
    %143 = arith.truncf %112 : vector<80x64xf32> to vector<80x64xbf16>
    %144 = arith.truncf %141 : vector<80x64xf32> to vector<80x64xbf16>
    %145 = vector.extract_strided_slice %142 {offsets = [0, 0], sizes = [64, 64], strides = [1, 1]} : vector<80x64xbf16> to vector<64x64xbf16>
    %146 = vector.extract_strided_slice %143 {offsets = [0, 0], sizes = [64, 64], strides = [1, 1]} : vector<80x64xbf16> to vector<64x64xbf16>
    %147 = vector.extract_strided_slice %144 {offsets = [0, 0], sizes = [64, 64], strides = [1, 1]} : vector<80x64xbf16> to vector<64x64xbf16>
    %148 = vector.extract_strided_slice %142 {offsets = [8, 0], sizes = [64, 64], strides = [1, 1]} : vector<80x64xbf16> to vector<64x64xbf16>
    %149 = vector.extract_strided_slice %143 {offsets = [8, 0], sizes = [64, 64], strides = [1, 1]} : vector<80x64xbf16> to vector<64x64xbf16>
    %150 = vector.extract_strided_slice %144 {offsets = [8, 0], sizes = [64, 64], strides = [1, 1]} : vector<80x64xbf16> to vector<64x64xbf16>
    %151 = vector.extract_strided_slice %142 {offsets = [16, 0], sizes = [64, 64], strides = [1, 1]} : vector<80x64xbf16> to vector<64x64xbf16>
    %152 = vector.extract_strided_slice %143 {offsets = [16, 0], sizes = [64, 64], strides = [1, 1]} : vector<80x64xbf16> to vector<64x64xbf16>
    %153 = vector.extract_strided_slice %144 {offsets = [16, 0], sizes = [64, 64], strides = [1, 1]} : vector<80x64xbf16> to vector<64x64xbf16>
    %154 = tpu.concatenate %145, %146, %147, %148, %149, %150, %151, %152, %153 in 1 : vector<64x64xbf16>, vector<64x64xbf16>, vector<64x64xbf16>, vector<64x64xbf16>, vector<64x64xbf16>, vector<64x64xbf16>, vector<64x64xbf16>, vector<64x64xbf16>, vector<64x64xbf16> -> vector<64x576xbf16>
    %cst_47 = arith.constant dense<0.000000e+00> : vector<64x128xf32>
    %155 = tpu.matmul %154, %108, %cst_47 {dimension_numbers = #tpu.dot_dimension_numbers<[1], [0], [0], [1], [0, 0, 1, 1], [], []>} : vector<64x576xbf16>, vector<576x128xbf16>, vector<64x128xf32> -> vector<64x128xf32>
    %156 = vector.broadcast %109 : vector<1x128xf32> to vector<64x128xf32>
    %157 = arith.addf %155, %156 : vector<64x128xf32>
    %cst_48 = arith.constant 0.000000e+00 : f32
    %158 = vector.broadcast %cst_48 : f32 to vector<64x128xf32>
    %159 = arith.maximumf %157, %158 : vector<64x128xf32>
    %c0_49 = arith.constant 0 : index
    %c0_50 = arith.constant 0 : index
    %160 = vector.load %arg10[%c0_49, %c0_50] : memref<36x32xbf16, #tpu.memory_space<vmem>>, vector<36x32xbf16>
    %c0_51 = arith.constant 0 : index
    %c0_52 = arith.constant 0 : index
    %161 = vector.load %arg11[%c0_51, %c0_52] : memref<1x32xf32, #tpu.memory_space<vmem>>, vector<1x32xf32>
    %162 = vector.extract_strided_slice %3 {offsets = [0, 0], sizes = [8, 4], strides = [1, 1]} : vector<64x4xf32> to vector<8x4xf32>
    %163 = vector.extract_strided_slice %3 {offsets = [56, 0], sizes = [8, 4], strides = [1, 1]} : vector<64x4xf32> to vector<8x4xf32>
    %164 = tpu.concatenate %162, %3, %163 in 0 : vector<8x4xf32>, vector<64x4xf32>, vector<8x4xf32> -> vector<80x4xf32>
    %165 = tpu.iota {dimensions = array<i32: 0>} : vector<80x1xi32>
    %c8_i32_53 = arith.constant 8 : i32
    %c0_i32_54 = arith.constant 0 : i32
    %166 = arith.cmpi eq, %c8_i32_53, %c0_i32_54 : i32
    %c1_i32_55 = arith.constant 1 : i32
    %167 = arith.select %166, %c1_i32_55, %c8_i32_53 : i32
    %168 = vector.broadcast %167 : i32 to vector<80x1xi32>
    %169 = arith.remsi %165, %168 : vector<80x1xi32>
    %c0_i32_56 = arith.constant 0 : i32
    %170 = vector.broadcast %c0_i32_56 : i32 to vector<80x1xi32>
    %171 = arith.cmpi ne, %169, %170 : vector<80x1xi32>
    %c0_i32_57 = arith.constant 0 : i32
    %172 = vector.broadcast %c0_i32_57 : i32 to vector<80x1xi32>
    %173 = arith.cmpi slt, %169, %172 : vector<80x1xi32>
    %c0_i32_58 = arith.constant 0 : i32
    %174 = arith.cmpi slt, %167, %c0_i32_58 : i32
    %175 = vector.broadcast %174 : i1 to vector<80x1xi1>
    %176 = vector.broadcast %175 : vector<80x1xi1> to vector<80x1xi1>
    %177 = arith.xori %173, %176 : vector<80x1xi1>
    %178 = arith.andi %177, %171 : vector<80x1xi1>
    %179 = vector.broadcast %167 : i32 to vector<80x1xi32>
    %180 = arith.addi %169, %179 : vector<80x1xi32>
    %181 = arith.select %178, %180, %169 : vector<80x1xi1>, vector<80x1xi32>
    %c0_i32_59 = arith.constant 0 : i32
    %182 = vector.broadcast %c0_i32_59 : i32 to vector<80x1xi32>
    %183 = arith.cmpi eq, %181, %182 : vector<80x1xi32>
    %c1_i32_60 = arith.constant 1 : i32
    %184 = tpu.dynamic_rotate %164 by %c1_i32_60 dim 0 : vector<80x4xf32>, i32 -> vector<80x4xf32>
    %185 = vector.shape_cast %183 : vector<80x1xi1> to vector<80x1xi1>
    %186 = vector.broadcast %185 : vector<80x1xi1> to vector<80x4xi1>
    %187 = arith.select %186, %164, %184 : vector<80x4xi1>, vector<80x4xf32>
    %c7_i32_61 = arith.constant 7 : i32
    %188 = vector.broadcast %c7_i32_61 : i32 to vector<80x1xi32>
    %189 = arith.cmpi eq, %181, %188 : vector<80x1xi32>
    %c79_i32_62 = arith.constant 79 : i32
    %190 = tpu.dynamic_rotate %164 by %c79_i32_62 dim 0 : vector<80x4xf32>, i32 -> vector<80x4xf32>
    %191 = vector.shape_cast %189 : vector<80x1xi1> to vector<80x1xi1>
    %192 = vector.broadcast %191 : vector<80x1xi1> to vector<80x4xi1>
    %193 = arith.select %192, %164, %190 : vector<80x4xi1>, vector<80x4xf32>
    %194 = arith.truncf %187 : vector<80x4xf32> to vector<80x4xbf16>
    %195 = arith.truncf %164 : vector<80x4xf32> to vector<80x4xbf16>
    %196 = arith.truncf %193 : vector<80x4xf32> to vector<80x4xbf16>
    %197 = vector.extract_strided_slice %194 {offsets = [0, 0], sizes = [64, 4], strides = [1, 1]} : vector<80x4xbf16> to vector<64x4xbf16>
    %198 = vector.extract_strided_slice %195 {offsets = [0, 0], sizes = [64, 4], strides = [1, 1]} : vector<80x4xbf16> to vector<64x4xbf16>
    %199 = vector.extract_strided_slice %196 {offsets = [0, 0], sizes = [64, 4], strides = [1, 1]} : vector<80x4xbf16> to vector<64x4xbf16>
    %200 = vector.extract_strided_slice %194 {offsets = [8, 0], sizes = [64, 4], strides = [1, 1]} : vector<80x4xbf16> to vector<64x4xbf16>
    %201 = vector.extract_strided_slice %195 {offsets = [8, 0], sizes = [64, 4], strides = [1, 1]} : vector<80x4xbf16> to vector<64x4xbf16>
    %202 = vector.extract_strided_slice %196 {offsets = [8, 0], sizes = [64, 4], strides = [1, 1]} : vector<80x4xbf16> to vector<64x4xbf16>
    %203 = vector.extract_strided_slice %194 {offsets = [16, 0], sizes = [64, 4], strides = [1, 1]} : vector<80x4xbf16> to vector<64x4xbf16>
    %204 = vector.extract_strided_slice %195 {offsets = [16, 0], sizes = [64, 4], strides = [1, 1]} : vector<80x4xbf16> to vector<64x4xbf16>
    %205 = vector.extract_strided_slice %196 {offsets = [16, 0], sizes = [64, 4], strides = [1, 1]} : vector<80x4xbf16> to vector<64x4xbf16>
    %206 = tpu.concatenate %197, %198, %199, %200, %201, %202, %203, %204, %205 in 1 : vector<64x4xbf16>, vector<64x4xbf16>, vector<64x4xbf16>, vector<64x4xbf16>, vector<64x4xbf16>, vector<64x4xbf16>, vector<64x4xbf16>, vector<64x4xbf16>, vector<64x4xbf16> -> vector<64x36xbf16>
    %cst_63 = arith.constant dense<0.000000e+00> : vector<64x32xf32>
    %207 = tpu.matmul %206, %160, %cst_63 {dimension_numbers = #tpu.dot_dimension_numbers<[1], [0], [0], [1], [0, 0, 1, 1], [], []>} : vector<64x36xbf16>, vector<36x32xbf16>, vector<64x32xf32> -> vector<64x32xf32>
    %208 = vector.broadcast %161 : vector<1x32xf32> to vector<64x32xf32>
    %209 = arith.addf %207, %208 : vector<64x32xf32>
    %cst_64 = arith.constant 0.000000e+00 : f32
    %210 = vector.broadcast %cst_64 : f32 to vector<64x32xf32>
    %211 = arith.maximumf %209, %210 : vector<64x32xf32>
    %c0_65 = arith.constant 0 : index
    %c0_66 = arith.constant 0 : index
    %212 = vector.load %arg12[%c0_65, %c0_66] : memref<288x64xbf16, #tpu.memory_space<vmem>>, vector<288x64xbf16>
    %c0_67 = arith.constant 0 : index
    %c0_68 = arith.constant 0 : index
    %213 = vector.load %arg13[%c0_67, %c0_68] : memref<1x64xf32, #tpu.memory_space<vmem>>, vector<1x64xf32>
    %214 = vector.extract_strided_slice %211 {offsets = [0, 0], sizes = [8, 32], strides = [1, 1]} : vector<64x32xf32> to vector<8x32xf32>
    %215 = vector.extract_strided_slice %211 {offsets = [56, 0], sizes = [8, 32], strides = [1, 1]} : vector<64x32xf32> to vector<8x32xf32>
    %216 = tpu.concatenate %214, %211, %215 in 0 : vector<8x32xf32>, vector<64x32xf32>, vector<8x32xf32> -> vector<80x32xf32>
    %217 = tpu.iota {dimensions = array<i32: 0>} : vector<80x1xi32>
    %c8_i32_69 = arith.constant 8 : i32
    %c0_i32_70 = arith.constant 0 : i32
    %218 = arith.cmpi eq, %c8_i32_69, %c0_i32_70 : i32
    %c1_i32_71 = arith.constant 1 : i32
    %219 = arith.select %218, %c1_i32_71, %c8_i32_69 : i32
    %220 = vector.broadcast %219 : i32 to vector<80x1xi32>
    %221 = arith.remsi %217, %220 : vector<80x1xi32>
    %c0_i32_72 = arith.constant 0 : i32
    %222 = vector.broadcast %c0_i32_72 : i32 to vector<80x1xi32>
    %223 = arith.cmpi ne, %221, %222 : vector<80x1xi32>
    %c0_i32_73 = arith.constant 0 : i32
    %224 = vector.broadcast %c0_i32_73 : i32 to vector<80x1xi32>
    %225 = arith.cmpi slt, %221, %224 : vector<80x1xi32>
    %c0_i32_74 = arith.constant 0 : i32
    %226 = arith.cmpi slt, %219, %c0_i32_74 : i32
    %227 = vector.broadcast %226 : i1 to vector<80x1xi1>
    %228 = vector.broadcast %227 : vector<80x1xi1> to vector<80x1xi1>
    %229 = arith.xori %225, %228 : vector<80x1xi1>
    %230 = arith.andi %229, %223 : vector<80x1xi1>
    %231 = vector.broadcast %219 : i32 to vector<80x1xi32>
    %232 = arith.addi %221, %231 : vector<80x1xi32>
    %233 = arith.select %230, %232, %221 : vector<80x1xi1>, vector<80x1xi32>
    %c0_i32_75 = arith.constant 0 : i32
    %234 = vector.broadcast %c0_i32_75 : i32 to vector<80x1xi32>
    %235 = arith.cmpi eq, %233, %234 : vector<80x1xi32>
    %c1_i32_76 = arith.constant 1 : i32
    %236 = tpu.dynamic_rotate %216 by %c1_i32_76 dim 0 : vector<80x32xf32>, i32 -> vector<80x32xf32>
    %237 = vector.shape_cast %235 : vector<80x1xi1> to vector<80x1xi1>
    %238 = vector.broadcast %237 : vector<80x1xi1> to vector<80x32xi1>
    %239 = arith.select %238, %216, %236 : vector<80x32xi1>, vector<80x32xf32>
    %c7_i32_77 = arith.constant 7 : i32
    %240 = vector.broadcast %c7_i32_77 : i32 to vector<80x1xi32>
    %241 = arith.cmpi eq, %233, %240 : vector<80x1xi32>
    %c79_i32_78 = arith.constant 79 : i32
    %242 = tpu.dynamic_rotate %216 by %c79_i32_78 dim 0 : vector<80x32xf32>, i32 -> vector<80x32xf32>
    %243 = vector.shape_cast %241 : vector<80x1xi1> to vector<80x1xi1>
    %244 = vector.broadcast %243 : vector<80x1xi1> to vector<80x32xi1>
    %245 = arith.select %244, %216, %242 : vector<80x32xi1>, vector<80x32xf32>
    %246 = arith.truncf %239 : vector<80x32xf32> to vector<80x32xbf16>
    %247 = arith.truncf %216 : vector<80x32xf32> to vector<80x32xbf16>
    %248 = arith.truncf %245 : vector<80x32xf32> to vector<80x32xbf16>
    %249 = vector.extract_strided_slice %246 {offsets = [0, 0], sizes = [64, 32], strides = [1, 1]} : vector<80x32xbf16> to vector<64x32xbf16>
    %250 = vector.extract_strided_slice %247 {offsets = [0, 0], sizes = [64, 32], strides = [1, 1]} : vector<80x32xbf16> to vector<64x32xbf16>
    %251 = vector.extract_strided_slice %248 {offsets = [0, 0], sizes = [64, 32], strides = [1, 1]} : vector<80x32xbf16> to vector<64x32xbf16>
    %252 = vector.extract_strided_slice %246 {offsets = [8, 0], sizes = [64, 32], strides = [1, 1]} : vector<80x32xbf16> to vector<64x32xbf16>
    %253 = vector.extract_strided_slice %247 {offsets = [8, 0], sizes = [64, 32], strides = [1, 1]} : vector<80x32xbf16> to vector<64x32xbf16>
    %254 = vector.extract_strided_slice %248 {offsets = [8, 0], sizes = [64, 32], strides = [1, 1]} : vector<80x32xbf16> to vector<64x32xbf16>
    %255 = vector.extract_strided_slice %246 {offsets = [16, 0], sizes = [64, 32], strides = [1, 1]} : vector<80x32xbf16> to vector<64x32xbf16>
    %256 = vector.extract_strided_slice %247 {offsets = [16, 0], sizes = [64, 32], strides = [1, 1]} : vector<80x32xbf16> to vector<64x32xbf16>
    %257 = vector.extract_strided_slice %248 {offsets = [16, 0], sizes = [64, 32], strides = [1, 1]} : vector<80x32xbf16> to vector<64x32xbf16>
    %258 = tpu.concatenate %249, %250, %251, %252, %253, %254, %255, %256, %257 in 1 : vector<64x32xbf16>, vector<64x32xbf16>, vector<64x32xbf16>, vector<64x32xbf16>, vector<64x32xbf16>, vector<64x32xbf16>, vector<64x32xbf16>, vector<64x32xbf16>, vector<64x32xbf16> -> vector<64x288xbf16>
    %cst_79 = arith.constant dense<0.000000e+00> : vector<64x64xf32>
    %259 = tpu.matmul %258, %212, %cst_79 {dimension_numbers = #tpu.dot_dimension_numbers<[1], [0], [0], [1], [0, 0, 1, 1], [], []>} : vector<64x288xbf16>, vector<288x64xbf16>, vector<64x64xf32> -> vector<64x64xf32>
    %260 = vector.broadcast %213 : vector<1x64xf32> to vector<64x64xf32>
    %261 = arith.addf %259, %260 : vector<64x64xf32>
    %cst_80 = arith.constant 0.000000e+00 : f32
    %262 = vector.broadcast %cst_80 : f32 to vector<64x64xf32>
    %263 = arith.maximumf %261, %262 : vector<64x64xf32>
    %c0_81 = arith.constant 0 : index
    %c0_82 = arith.constant 0 : index
    %264 = vector.load %arg14[%c0_81, %c0_82] : memref<576x128xbf16, #tpu.memory_space<vmem>>, vector<576x128xbf16>
    %c0_83 = arith.constant 0 : index
    %c0_84 = arith.constant 0 : index
    %265 = vector.load %arg15[%c0_83, %c0_84] : memref<1x128xf32, #tpu.memory_space<vmem>>, vector<1x128xf32>
    %266 = vector.extract_strided_slice %263 {offsets = [0, 0], sizes = [8, 64], strides = [1, 1]} : vector<64x64xf32> to vector<8x64xf32>
    %267 = vector.extract_strided_slice %263 {offsets = [56, 0], sizes = [8, 64], strides = [1, 1]} : vector<64x64xf32> to vector<8x64xf32>
    %268 = tpu.concatenate %266, %263, %267 in 0 : vector<8x64xf32>, vector<64x64xf32>, vector<8x64xf32> -> vector<80x64xf32>
    %269 = tpu.iota {dimensions = array<i32: 0>} : vector<80x1xi32>
    %c8_i32_85 = arith.constant 8 : i32
    %c0_i32_86 = arith.constant 0 : i32
    %270 = arith.cmpi eq, %c8_i32_85, %c0_i32_86 : i32
    %c1_i32_87 = arith.constant 1 : i32
    %271 = arith.select %270, %c1_i32_87, %c8_i32_85 : i32
    %272 = vector.broadcast %271 : i32 to vector<80x1xi32>
    %273 = arith.remsi %269, %272 : vector<80x1xi32>
    %c0_i32_88 = arith.constant 0 : i32
    %274 = vector.broadcast %c0_i32_88 : i32 to vector<80x1xi32>
    %275 = arith.cmpi ne, %273, %274 : vector<80x1xi32>
    %c0_i32_89 = arith.constant 0 : i32
    %276 = vector.broadcast %c0_i32_89 : i32 to vector<80x1xi32>
    %277 = arith.cmpi slt, %273, %276 : vector<80x1xi32>
    %c0_i32_90 = arith.constant 0 : i32
    %278 = arith.cmpi slt, %271, %c0_i32_90 : i32
    %279 = vector.broadcast %278 : i1 to vector<80x1xi1>
    %280 = vector.broadcast %279 : vector<80x1xi1> to vector<80x1xi1>
    %281 = arith.xori %277, %280 : vector<80x1xi1>
    %282 = arith.andi %281, %275 : vector<80x1xi1>
    %283 = vector.broadcast %271 : i32 to vector<80x1xi32>
    %284 = arith.addi %273, %283 : vector<80x1xi32>
    %285 = arith.select %282, %284, %273 : vector<80x1xi1>, vector<80x1xi32>
    %c0_i32_91 = arith.constant 0 : i32
    %286 = vector.broadcast %c0_i32_91 : i32 to vector<80x1xi32>
    %287 = arith.cmpi eq, %285, %286 : vector<80x1xi32>
    %c1_i32_92 = arith.constant 1 : i32
    %288 = tpu.dynamic_rotate %268 by %c1_i32_92 dim 0 : vector<80x64xf32>, i32 -> vector<80x64xf32>
    %289 = vector.shape_cast %287 : vector<80x1xi1> to vector<80x1xi1>
    %290 = vector.broadcast %289 : vector<80x1xi1> to vector<80x64xi1>
    %291 = arith.select %290, %268, %288 : vector<80x64xi1>, vector<80x64xf32>
    %c7_i32_93 = arith.constant 7 : i32
    %292 = vector.broadcast %c7_i32_93 : i32 to vector<80x1xi32>
    %293 = arith.cmpi eq, %285, %292 : vector<80x1xi32>
    %c79_i32_94 = arith.constant 79 : i32
    %294 = tpu.dynamic_rotate %268 by %c79_i32_94 dim 0 : vector<80x64xf32>, i32 -> vector<80x64xf32>
    %295 = vector.shape_cast %293 : vector<80x1xi1> to vector<80x1xi1>
    %296 = vector.broadcast %295 : vector<80x1xi1> to vector<80x64xi1>
    %297 = arith.select %296, %268, %294 : vector<80x64xi1>, vector<80x64xf32>
    %298 = arith.truncf %291 : vector<80x64xf32> to vector<80x64xbf16>
    %299 = arith.truncf %268 : vector<80x64xf32> to vector<80x64xbf16>
    %300 = arith.truncf %297 : vector<80x64xf32> to vector<80x64xbf16>
    %301 = vector.extract_strided_slice %298 {offsets = [0, 0], sizes = [64, 64], strides = [1, 1]} : vector<80x64xbf16> to vector<64x64xbf16>
    %302 = vector.extract_strided_slice %299 {offsets = [0, 0], sizes = [64, 64], strides = [1, 1]} : vector<80x64xbf16> to vector<64x64xbf16>
    %303 = vector.extract_strided_slice %300 {offsets = [0, 0], sizes = [64, 64], strides = [1, 1]} : vector<80x64xbf16> to vector<64x64xbf16>
    %304 = vector.extract_strided_slice %298 {offsets = [8, 0], sizes = [64, 64], strides = [1, 1]} : vector<80x64xbf16> to vector<64x64xbf16>
    %305 = vector.extract_strided_slice %299 {offsets = [8, 0], sizes = [64, 64], strides = [1, 1]} : vector<80x64xbf16> to vector<64x64xbf16>
    %306 = vector.extract_strided_slice %300 {offsets = [8, 0], sizes = [64, 64], strides = [1, 1]} : vector<80x64xbf16> to vector<64x64xbf16>
    %307 = vector.extract_strided_slice %298 {offsets = [16, 0], sizes = [64, 64], strides = [1, 1]} : vector<80x64xbf16> to vector<64x64xbf16>
    %308 = vector.extract_strided_slice %299 {offsets = [16, 0], sizes = [64, 64], strides = [1, 1]} : vector<80x64xbf16> to vector<64x64xbf16>
    %309 = vector.extract_strided_slice %300 {offsets = [16, 0], sizes = [64, 64], strides = [1, 1]} : vector<80x64xbf16> to vector<64x64xbf16>
    %310 = tpu.concatenate %301, %302, %303, %304, %305, %306, %307, %308, %309 in 1 : vector<64x64xbf16>, vector<64x64xbf16>, vector<64x64xbf16>, vector<64x64xbf16>, vector<64x64xbf16>, vector<64x64xbf16>, vector<64x64xbf16>, vector<64x64xbf16>, vector<64x64xbf16> -> vector<64x576xbf16>
    %cst_95 = arith.constant dense<0.000000e+00> : vector<64x128xf32>
    %311 = tpu.matmul %310, %264, %cst_95 {dimension_numbers = #tpu.dot_dimension_numbers<[1], [0], [0], [1], [0, 0, 1, 1], [], []>} : vector<64x576xbf16>, vector<576x128xbf16>, vector<64x128xf32> -> vector<64x128xf32>
    %312 = vector.broadcast %265 : vector<1x128xf32> to vector<64x128xf32>
    %313 = arith.addf %311, %312 : vector<64x128xf32>
    %cst_96 = arith.constant 0.000000e+00 : f32
    %314 = vector.broadcast %cst_96 : f32 to vector<64x128xf32>
    %315 = arith.maximumf %313, %314 : vector<64x128xf32>
    %316 = arith.addf %159, %315 : vector<64x128xf32>
    %c0_97 = arith.constant 0 : index
    %c0_98 = arith.constant 0 : index
    %c0_99 = arith.constant 0 : index
    %c0_100 = arith.constant 0 : index
    %317 = vector.load %arg16[%c0_97, %c0_98, %c0_99, %c0_100] : memref<1x1x64x128xf32, #tpu.memory_space<vmem>>, vector<1x1x64x128xf32>
    %318 = vector.shape_cast %317 : vector<1x1x64x128xf32> to vector<64x128xf32>
    %319 = vector.shape_cast %316 : vector<64x128xf32> to vector<1x1x64x128xf32>
    tpu.vector_store %arg16[%c0_97, %c0_98, %c0_99, %c0_100], %319 {strides = array<i32>} : memref<1x1x64x128xf32, #tpu.memory_space<vmem>>, vector<1x1x64x128xf32>,
    return
  }
  func.func @transform_0(%arg0: i32, %arg1: i32) -> (i32, i32, i32, i32) {
    %c0_i32 = arith.constant 0 : i32
    %c0_i32_0 = arith.constant 0 : i32
    %c0_i32_1 = arith.constant 0 : i32
    return %arg0, %arg1, %c0_i32, %c0_i32_0 : i32, i32, i32, i32
  }
  func.func @transform_1(%arg0: i32, %arg1: i32) -> (i32, i32, i32, i32) {
    %c0_i32 = arith.constant 0 : i32
    %c0_i32_0 = arith.constant 0 : i32
    %c0_i32_1 = arith.constant 0 : i32
    return %arg0, %arg1, %c0_i32, %c0_i32_0 : i32, i32, i32, i32
  }
  func.func @transform_2(%arg0: i32, %arg1: i32) -> (i32, i32) {
    %c0_i32 = arith.constant 0 : i32
    %c0_i32_0 = arith.constant 0 : i32
    %c0_i32_1 = arith.constant 0 : i32
    return %c0_i32, %c0_i32_0 : i32, i32
  }
  func.func @transform_3(%arg0: i32, %arg1: i32) -> (i32, i32) {
    %c0_i32 = arith.constant 0 : i32
    %c0_i32_0 = arith.constant 0 : i32
    %c0_i32_1 = arith.constant 0 : i32
    return %c0_i32, %c0_i32_0 : i32, i32
  }
  func.func @transform_4(%arg0: i32, %arg1: i32) -> (i32, i32) {
    %c0_i32 = arith.constant 0 : i32
    %c0_i32_0 = arith.constant 0 : i32
    %c0_i32_1 = arith.constant 0 : i32
    return %c0_i32, %c0_i32_0 : i32, i32
  }
  func.func @transform_5(%arg0: i32, %arg1: i32) -> (i32, i32) {
    %c0_i32 = arith.constant 0 : i32
    %c0_i32_0 = arith.constant 0 : i32
    %c0_i32_1 = arith.constant 0 : i32
    return %c0_i32, %c0_i32_0 : i32, i32
  }
  func.func @transform_6(%arg0: i32, %arg1: i32) -> (i32, i32) {
    %c0_i32 = arith.constant 0 : i32
    %c0_i32_0 = arith.constant 0 : i32
    %c0_i32_1 = arith.constant 0 : i32
    return %c0_i32, %c0_i32_0 : i32, i32
  }
  func.func @transform_7(%arg0: i32, %arg1: i32) -> (i32, i32) {
    %c0_i32 = arith.constant 0 : i32
    %c0_i32_0 = arith.constant 0 : i32
    %c0_i32_1 = arith.constant 0 : i32
    return %c0_i32, %c0_i32_0 : i32, i32
  }
  func.func @transform_8(%arg0: i32, %arg1: i32) -> (i32, i32) {
    %c0_i32 = arith.constant 0 : i32
    %c0_i32_0 = arith.constant 0 : i32
    %c0_i32_1 = arith.constant 0 : i32
    return %c0_i32, %c0_i32_0 : i32, i32
  }
  func.func @transform_9(%arg0: i32, %arg1: i32) -> (i32, i32) {
    %c0_i32 = arith.constant 0 : i32
    %c0_i32_0 = arith.constant 0 : i32
    %c0_i32_1 = arith.constant 0 : i32
    return %c0_i32, %c0_i32_0 : i32, i32
  }
  func.func @transform_10(%arg0: i32, %arg1: i32) -> (i32, i32) {
    %c0_i32 = arith.constant 0 : i32
    %c0_i32_0 = arith.constant 0 : i32
    %c0_i32_1 = arith.constant 0 : i32
    return %c0_i32, %c0_i32_0 : i32, i32
  }
  func.func @transform_11(%arg0: i32, %arg1: i32) -> (i32, i32) {
    %c0_i32 = arith.constant 0 : i32
    %c0_i32_0 = arith.constant 0 : i32
    %c0_i32_1 = arith.constant 0 : i32
    return %c0_i32, %c0_i32_0 : i32, i32
  }
  func.func @transform_12(%arg0: i32, %arg1: i32) -> (i32, i32) {
    %c0_i32 = arith.constant 0 : i32
    %c0_i32_0 = arith.constant 0 : i32
    %c0_i32_1 = arith.constant 0 : i32
    return %c0_i32, %c0_i32_0 : i32, i32
  }
  func.func @transform_13(%arg0: i32, %arg1: i32) -> (i32, i32) {
    %c0_i32 = arith.constant 0 : i32
    %c0_i32_0 = arith.constant 0 : i32
    %c0_i32_1 = arith.constant 0 : i32
    return %c0_i32, %c0_i32_0 : i32, i32
  }
  func.func @transform_14(%arg0: i32, %arg1: i32) -> (i32, i32, i32, i32) {
    %c0_i32 = arith.constant 0 : i32
    %c0_i32_0 = arith.constant 0 : i32
    %c0_i32_1 = arith.constant 0 : i32
    return %arg0, %arg1, %c0_i32, %c0_i32_0 : i32, i32, i32, i32
  }
}

module attributes {stable_mosaic.version = 11 : i64} {
  func.func @_tail_kernel(%arg0: i32, %arg1: memref<1x256x128xf32, #tpu.memory_space<vmem>>, %arg2: memref<1x256x4xf32, #tpu.memory_space<vmem>>, %arg3: memref<1152x64xbf16, #tpu.memory_space<vmem>>, %arg4: memref<1x64xf32, #tpu.memory_space<vmem>>, %arg5: memref<576x32xbf16, #tpu.memory_space<vmem>>, %arg6: memref<1x32xf32, #tpu.memory_space<vmem>>, %arg7: memref<32x4xbf16, #tpu.memory_space<vmem>>, %arg8: memref<1x4xf32, #tpu.memory_space<vmem>>, %arg9: memref<72x32xbf16, #tpu.memory_space<vmem>>, %arg10: memref<1x32xf32, #tpu.memory_space<vmem>>, %arg11: memref<32x2xbf16, #tpu.memory_space<vmem>>, %arg12: memref<2x32xbf16, #tpu.memory_space<vmem>>, %arg13: memref<98x1xbf16, #tpu.memory_space<vmem>>, %arg14: memref<288x64xbf16, #tpu.memory_space<vmem>>, %arg15: memref<1x64xf32, #tpu.memory_space<vmem>>, %arg16: memref<64x4xbf16, #tpu.memory_space<vmem>>, %arg17: memref<4x64xbf16, #tpu.memory_space<vmem>>, %arg18: memref<98x1xbf16, #tpu.memory_space<vmem>>, %arg19: memref<576x128xbf16, #tpu.memory_space<vmem>>, %arg20: memref<1x128xf32, #tpu.memory_space<vmem>>, %arg21: memref<128x8xbf16, #tpu.memory_space<vmem>>, %arg22: memref<8x128xbf16, #tpu.memory_space<vmem>>, %arg23: memref<98x1xbf16, #tpu.memory_space<vmem>>, %arg24: memref<1152x64xbf16, #tpu.memory_space<vmem>>, %arg25: memref<1x64xf32, #tpu.memory_space<vmem>>, %arg26: memref<576x32xbf16, #tpu.memory_space<vmem>>, %arg27: memref<1x32xf32, #tpu.memory_space<vmem>>, %arg28: memref<32x4xbf16, #tpu.memory_space<vmem>>, %arg29: memref<1x4xf32, #tpu.memory_space<vmem>>, %arg30: memref<1x256x4xf32, #tpu.memory_space<vmem>>) attributes {dimension_semantics = [#tpu.dimension_semantics<parallel>], iteration_bounds = array<i64: 2>, scalar_prefetch = 0 : i64, scratch_operands = 0 : i64, tpu.core_type = #tpu.core_type<tc>, window_params = [{transform_indices = @transform_0, window_bounds = array<i64: 1, 256, 128>}, {transform_indices = @transform_1, window_bounds = array<i64: 1, 256, 4>}, {pipeline_mode = #tpu.pipeline_mode<synchronous>, transform_indices = @transform_2, window_bounds = array<i64: 1152, 64>}, {pipeline_mode = #tpu.pipeline_mode<synchronous>, transform_indices = @transform_3, window_bounds = array<i64: 1, 64>}, {pipeline_mode = #tpu.pipeline_mode<synchronous>, transform_indices = @transform_4, window_bounds = array<i64: 576, 32>}, {pipeline_mode = #tpu.pipeline_mode<synchronous>, transform_indices = @transform_5, window_bounds = array<i64: 1, 32>}, {pipeline_mode = #tpu.pipeline_mode<synchronous>, transform_indices = @transform_6, window_bounds = array<i64: 32, 4>}, {pipeline_mode = #tpu.pipeline_mode<synchronous>, transform_indices = @transform_7, window_bounds = array<i64: 1, 4>}, {pipeline_mode = #tpu.pipeline_mode<synchronous>, transform_indices = @transform_8, window_bounds = array<i64: 72, 32>}, {pipeline_mode = #tpu.pipeline_mode<synchronous>, transform_indices = @transform_9, window_bounds = array<i64: 1, 32>}, {pipeline_mode = #tpu.pipeline_mode<synchronous>, transform_indices = @transform_10, window_bounds = array<i64: 32, 2>}, {pipeline_mode = #tpu.pipeline_mode<synchronous>, transform_indices = @transform_11, window_bounds = array<i64: 2, 32>}, {pipeline_mode = #tpu.pipeline_mode<synchronous>, transform_indices = @transform_12, window_bounds = array<i64: 98, 1>}, {pipeline_mode = #tpu.pipeline_mode<synchronous>, transform_indices = @transform_13, window_bounds = array<i64: 288, 64>}, {pipeline_mode = #tpu.pipeline_mode<synchronous>, transform_indices = @transform_14, window_bounds = array<i64: 1, 64>}, {pipeline_mode = #tpu.pipeline_mode<synchronous>, transform_indices = @transform_15, window_bounds = array<i64: 64, 4>}, {pipeline_mode = #tpu.pipeline_mode<synchronous>, transform_indices = @transform_16, window_bounds = array<i64: 4, 64>}, {pipeline_mode = #tpu.pipeline_mode<synchronous>, transform_indices = @transform_17, window_bounds = array<i64: 98, 1>}, {pipeline_mode = #tpu.pipeline_mode<synchronous>, transform_indices = @transform_18, window_bounds = array<i64: 576, 128>}, {pipeline_mode = #tpu.pipeline_mode<synchronous>, transform_indices = @transform_19, window_bounds = array<i64: 1, 128>}, {pipeline_mode = #tpu.pipeline_mode<synchronous>, transform_indices = @transform_20, window_bounds = array<i64: 128, 8>}, {pipeline_mode = #tpu.pipeline_mode<synchronous>, transform_indices = @transform_21, window_bounds = array<i64: 8, 128>}, {pipeline_mode = #tpu.pipeline_mode<synchronous>, transform_indices = @transform_22, window_bounds = array<i64: 98, 1>}, {pipeline_mode = #tpu.pipeline_mode<synchronous>, transform_indices = @transform_23, window_bounds = array<i64: 1152, 64>}, {pipeline_mode = #tpu.pipeline_mode<synchronous>, transform_indices = @transform_24, window_bounds = array<i64: 1, 64>}, {pipeline_mode = #tpu.pipeline_mode<synchronous>, transform_indices = @transform_25, window_bounds = array<i64: 576, 32>}, {pipeline_mode = #tpu.pipeline_mode<synchronous>, transform_indices = @transform_26, window_bounds = array<i64: 1, 32>}, {pipeline_mode = #tpu.pipeline_mode<synchronous>, transform_indices = @transform_27, window_bounds = array<i64: 32, 4>}, {pipeline_mode = #tpu.pipeline_mode<synchronous>, transform_indices = @transform_28, window_bounds = array<i64: 1, 4>}, {transform_indices = @transform_29, window_bounds = array<i64: 1, 256, 4>}]} {
    %c0 = arith.constant 0 : index
    %c0_0 = arith.constant 0 : index
    %c0_1 = arith.constant 0 : index
    %0 = vector.load %arg1[%c0, %c0_0, %c0_1] : memref<1x256x128xf32, #tpu.memory_space<vmem>>, vector<1x256x128xf32>
    %1 = vector.shape_cast %0 : vector<1x256x128xf32> to vector<256x128xf32>
    %c0_2 = arith.constant 0 : index
    %c0_3 = arith.constant 0 : index
    %2 = vector.load %arg3[%c0_2, %c0_3] : memref<1152x64xbf16, #tpu.memory_space<vmem>>, vector<1152x64xbf16>
    %c0_4 = arith.constant 0 : index
    %c0_5 = arith.constant 0 : index
    %3 = vector.load %arg4[%c0_4, %c0_5] : memref<1x64xf32, #tpu.memory_space<vmem>>, vector<1x64xf32>
    %4 = vector.extract_strided_slice %1 {offsets = [0, 0], sizes = [16, 128], strides = [1, 1]} : vector<256x128xf32> to vector<16x128xf32>
    %5 = vector.extract_strided_slice %1 {offsets = [240, 0], sizes = [16, 128], strides = [1, 1]} : vector<256x128xf32> to vector<16x128xf32>
    %6 = tpu.concatenate %4, %1, %5 in 0 : vector<16x128xf32>, vector<256x128xf32>, vector<16x128xf32> -> vector<288x128xf32>
    %7 = tpu.iota {dimensions = array<i32: 0>} : vector<288x1xi32>
    %c16_i32 = arith.constant 16 : i32
    %c0_i32 = arith.constant 0 : i32
    %8 = arith.cmpi eq, %c16_i32, %c0_i32 : i32
    %c1_i32 = arith.constant 1 : i32
    %9 = arith.select %8, %c1_i32, %c16_i32 : i32
    %10 = vector.broadcast %9 : i32 to vector<288x1xi32>
    %11 = arith.remsi %7, %10 : vector<288x1xi32>
    %c0_i32_6 = arith.constant 0 : i32
    %12 = vector.broadcast %c0_i32_6 : i32 to vector<288x1xi32>
    %13 = arith.cmpi ne, %11, %12 : vector<288x1xi32>
    %c0_i32_7 = arith.constant 0 : i32
    %14 = vector.broadcast %c0_i32_7 : i32 to vector<288x1xi32>
    %15 = arith.cmpi slt, %11, %14 : vector<288x1xi32>
    %c0_i32_8 = arith.constant 0 : i32
    %16 = arith.cmpi slt, %9, %c0_i32_8 : i32
    %17 = vector.broadcast %16 : i1 to vector<288x1xi1>
    %18 = vector.broadcast %17 : vector<288x1xi1> to vector<288x1xi1>
    %19 = arith.xori %15, %18 : vector<288x1xi1>
    %20 = arith.andi %19, %13 : vector<288x1xi1>
    %21 = vector.broadcast %9 : i32 to vector<288x1xi32>
    %22 = arith.addi %11, %21 : vector<288x1xi32>
    %23 = arith.select %20, %22, %11 : vector<288x1xi1>, vector<288x1xi32>
    %c0_i32_9 = arith.constant 0 : i32
    %24 = vector.broadcast %c0_i32_9 : i32 to vector<288x1xi32>
    %25 = arith.cmpi eq, %23, %24 : vector<288x1xi32>
    %c1_i32_10 = arith.constant 1 : i32
    %26 = tpu.dynamic_rotate %6 by %c1_i32_10 dim 0 : vector<288x128xf32>, i32 -> vector<288x128xf32>
    %27 = vector.shape_cast %25 : vector<288x1xi1> to vector<288x1xi1>
    %28 = vector.broadcast %27 : vector<288x1xi1> to vector<288x128xi1>
    %29 = arith.select %28, %6, %26 : vector<288x128xi1>, vector<288x128xf32>
    %c15_i32 = arith.constant 15 : i32
    %30 = vector.broadcast %c15_i32 : i32 to vector<288x1xi32>
    %31 = arith.cmpi eq, %23, %30 : vector<288x1xi32>
    %c287_i32 = arith.constant 287 : i32
    %32 = tpu.dynamic_rotate %6 by %c287_i32 dim 0 : vector<288x128xf32>, i32 -> vector<288x128xf32>
    %33 = vector.shape_cast %31 : vector<288x1xi1> to vector<288x1xi1>
    %34 = vector.broadcast %33 : vector<288x1xi1> to vector<288x128xi1>
    %35 = arith.select %34, %6, %32 : vector<288x128xi1>, vector<288x128xf32>
    %36 = arith.truncf %29 : vector<288x128xf32> to vector<288x128xbf16>
    %37 = arith.truncf %6 : vector<288x128xf32> to vector<288x128xbf16>
    %38 = arith.truncf %35 : vector<288x128xf32> to vector<288x128xbf16>
    %39 = vector.extract_strided_slice %36 {offsets = [0, 0], sizes = [256, 128], strides = [1, 1]} : vector<288x128xbf16> to vector<256x128xbf16>
    %40 = vector.extract_strided_slice %37 {offsets = [0, 0], sizes = [256, 128], strides = [1, 1]} : vector<288x128xbf16> to vector<256x128xbf16>
    %41 = vector.extract_strided_slice %38 {offsets = [0, 0], sizes = [256, 128], strides = [1, 1]} : vector<288x128xbf16> to vector<256x128xbf16>
    %42 = vector.extract_strided_slice %36 {offsets = [16, 0], sizes = [256, 128], strides = [1, 1]} : vector<288x128xbf16> to vector<256x128xbf16>
    %43 = vector.extract_strided_slice %37 {offsets = [16, 0], sizes = [256, 128], strides = [1, 1]} : vector<288x128xbf16> to vector<256x128xbf16>
    %44 = vector.extract_strided_slice %38 {offsets = [16, 0], sizes = [256, 128], strides = [1, 1]} : vector<288x128xbf16> to vector<256x128xbf16>
    %45 = vector.extract_strided_slice %36 {offsets = [32, 0], sizes = [256, 128], strides = [1, 1]} : vector<288x128xbf16> to vector<256x128xbf16>
    %46 = vector.extract_strided_slice %37 {offsets = [32, 0], sizes = [256, 128], strides = [1, 1]} : vector<288x128xbf16> to vector<256x128xbf16>
    %47 = vector.extract_strided_slice %38 {offsets = [32, 0], sizes = [256, 128], strides = [1, 1]} : vector<288x128xbf16> to vector<256x128xbf16>
    %48 = tpu.concatenate %39, %40, %41, %42, %43, %44, %45, %46, %47 in 1 : vector<256x128xbf16>, vector<256x128xbf16>, vector<256x128xbf16>, vector<256x128xbf16>, vector<256x128xbf16>, vector<256x128xbf16>, vector<256x128xbf16>, vector<256x128xbf16>, vector<256x128xbf16> -> vector<256x1152xbf16>
    %cst = arith.constant dense<0.000000e+00> : vector<256x64xf32>
    %49 = tpu.matmul %48, %2, %cst {dimension_numbers = #tpu.dot_dimension_numbers<[1], [0], [0], [1], [0, 0, 1, 1], [], []>} : vector<256x1152xbf16>, vector<1152x64xbf16>, vector<256x64xf32> -> vector<256x64xf32>
    %50 = vector.broadcast %3 : vector<1x64xf32> to vector<256x64xf32>
    %51 = arith.addf %49, %50 : vector<256x64xf32>
    %cst_11 = arith.constant 0.000000e+00 : f32
    %52 = vector.broadcast %cst_11 : f32 to vector<256x64xf32>
    %53 = arith.maximumf %51, %52 : vector<256x64xf32>
    %c0_12 = arith.constant 0 : index
    %c0_13 = arith.constant 0 : index
    %54 = vector.load %arg5[%c0_12, %c0_13] : memref<576x32xbf16, #tpu.memory_space<vmem>>, vector<576x32xbf16>
    %c0_14 = arith.constant 0 : index
    %c0_15 = arith.constant 0 : index
    %55 = vector.load %arg6[%c0_14, %c0_15] : memref<1x32xf32, #tpu.memory_space<vmem>>, vector<1x32xf32>
    %56 = vector.extract_strided_slice %53 {offsets = [0, 0], sizes = [16, 64], strides = [1, 1]} : vector<256x64xf32> to vector<16x64xf32>
    %57 = vector.extract_strided_slice %53 {offsets = [240, 0], sizes = [16, 64], strides = [1, 1]} : vector<256x64xf32> to vector<16x64xf32>
    %58 = tpu.concatenate %56, %53, %57 in 0 : vector<16x64xf32>, vector<256x64xf32>, vector<16x64xf32> -> vector<288x64xf32>
    %59 = tpu.iota {dimensions = array<i32: 0>} : vector<288x1xi32>
    %c16_i32_16 = arith.constant 16 : i32
    %c0_i32_17 = arith.constant 0 : i32
    %60 = arith.cmpi eq, %c16_i32_16, %c0_i32_17 : i32
    %c1_i32_18 = arith.constant 1 : i32
    %61 = arith.select %60, %c1_i32_18, %c16_i32_16 : i32
    %62 = vector.broadcast %61 : i32 to vector<288x1xi32>
    %63 = arith.remsi %59, %62 : vector<288x1xi32>
    %c0_i32_19 = arith.constant 0 : i32
    %64 = vector.broadcast %c0_i32_19 : i32 to vector<288x1xi32>
    %65 = arith.cmpi ne, %63, %64 : vector<288x1xi32>
    %c0_i32_20 = arith.constant 0 : i32
    %66 = vector.broadcast %c0_i32_20 : i32 to vector<288x1xi32>
    %67 = arith.cmpi slt, %63, %66 : vector<288x1xi32>
    %c0_i32_21 = arith.constant 0 : i32
    %68 = arith.cmpi slt, %61, %c0_i32_21 : i32
    %69 = vector.broadcast %68 : i1 to vector<288x1xi1>
    %70 = vector.broadcast %69 : vector<288x1xi1> to vector<288x1xi1>
    %71 = arith.xori %67, %70 : vector<288x1xi1>
    %72 = arith.andi %71, %65 : vector<288x1xi1>
    %73 = vector.broadcast %61 : i32 to vector<288x1xi32>
    %74 = arith.addi %63, %73 : vector<288x1xi32>
    %75 = arith.select %72, %74, %63 : vector<288x1xi1>, vector<288x1xi32>
    %c0_i32_22 = arith.constant 0 : i32
    %76 = vector.broadcast %c0_i32_22 : i32 to vector<288x1xi32>
    %77 = arith.cmpi eq, %75, %76 : vector<288x1xi32>
    %c1_i32_23 = arith.constant 1 : i32
    %78 = tpu.dynamic_rotate %58 by %c1_i32_23 dim 0 : vector<288x64xf32>, i32 -> vector<288x64xf32>
    %79 = vector.shape_cast %77 : vector<288x1xi1> to vector<288x1xi1>
    %80 = vector.broadcast %79 : vector<288x1xi1> to vector<288x64xi1>
    %81 = arith.select %80, %58, %78 : vector<288x64xi1>, vector<288x64xf32>
    %c15_i32_24 = arith.constant 15 : i32
    %82 = vector.broadcast %c15_i32_24 : i32 to vector<288x1xi32>
    %83 = arith.cmpi eq, %75, %82 : vector<288x1xi32>
    %c287_i32_25 = arith.constant 287 : i32
    %84 = tpu.dynamic_rotate %58 by %c287_i32_25 dim 0 : vector<288x64xf32>, i32 -> vector<288x64xf32>
    %85 = vector.shape_cast %83 : vector<288x1xi1> to vector<288x1xi1>
    %86 = vector.broadcast %85 : vector<288x1xi1> to vector<288x64xi1>
    %87 = arith.select %86, %58, %84 : vector<288x64xi1>, vector<288x64xf32>
    %88 = arith.truncf %81 : vector<288x64xf32> to vector<288x64xbf16>
    %89 = arith.truncf %58 : vector<288x64xf32> to vector<288x64xbf16>
    %90 = arith.truncf %87 : vector<288x64xf32> to vector<288x64xbf16>
    %91 = vector.extract_strided_slice %88 {offsets = [0, 0], sizes = [256, 64], strides = [1, 1]} : vector<288x64xbf16> to vector<256x64xbf16>
    %92 = vector.extract_strided_slice %89 {offsets = [0, 0], sizes = [256, 64], strides = [1, 1]} : vector<288x64xbf16> to vector<256x64xbf16>
    %93 = vector.extract_strided_slice %90 {offsets = [0, 0], sizes = [256, 64], strides = [1, 1]} : vector<288x64xbf16> to vector<256x64xbf16>
    %94 = vector.extract_strided_slice %88 {offsets = [16, 0], sizes = [256, 64], strides = [1, 1]} : vector<288x64xbf16> to vector<256x64xbf16>
    %95 = vector.extract_strided_slice %89 {offsets = [16, 0], sizes = [256, 64], strides = [1, 1]} : vector<288x64xbf16> to vector<256x64xbf16>
    %96 = vector.extract_strided_slice %90 {offsets = [16, 0], sizes = [256, 64], strides = [1, 1]} : vector<288x64xbf16> to vector<256x64xbf16>
    %97 = vector.extract_strided_slice %88 {offsets = [32, 0], sizes = [256, 64], strides = [1, 1]} : vector<288x64xbf16> to vector<256x64xbf16>
    %98 = vector.extract_strided_slice %89 {offsets = [32, 0], sizes = [256, 64], strides = [1, 1]} : vector<288x64xbf16> to vector<256x64xbf16>
    %99 = vector.extract_strided_slice %90 {offsets = [32, 0], sizes = [256, 64], strides = [1, 1]} : vector<288x64xbf16> to vector<256x64xbf16>
    %100 = tpu.concatenate %91, %92, %93, %94, %95, %96, %97, %98, %99 in 1 : vector<256x64xbf16>, vector<256x64xbf16>, vector<256x64xbf16>, vector<256x64xbf16>, vector<256x64xbf16>, vector<256x64xbf16>, vector<256x64xbf16>, vector<256x64xbf16>, vector<256x64xbf16> -> vector<256x576xbf16>
    %cst_26 = arith.constant dense<0.000000e+00> : vector<256x32xf32>
    %101 = tpu.matmul %100, %54, %cst_26 {dimension_numbers = #tpu.dot_dimension_numbers<[1], [0], [0], [1], [0, 0, 1, 1], [], []>} : vector<256x576xbf16>, vector<576x32xbf16>, vector<256x32xf32> -> vector<256x32xf32>
    %102 = vector.broadcast %55 : vector<1x32xf32> to vector<256x32xf32>
    %103 = arith.addf %101, %102 : vector<256x32xf32>
    %cst_27 = arith.constant 0.000000e+00 : f32
    %104 = vector.broadcast %cst_27 : f32 to vector<256x32xf32>
    %105 = arith.maximumf %103, %104 : vector<256x32xf32>
    %106 = arith.truncf %105 : vector<256x32xf32> to vector<256x32xbf16>
    %c0_28 = arith.constant 0 : index
    %c0_29 = arith.constant 0 : index
    %107 = vector.load %arg7[%c0_28, %c0_29] : memref<32x4xbf16, #tpu.memory_space<vmem>>, vector<32x4xbf16>
    %cst_30 = arith.constant dense<0.000000e+00> : vector<256x4xf32>
    %108 = tpu.matmul %106, %107, %cst_30 {dimension_numbers = #tpu.dot_dimension_numbers<[1], [0], [0], [1], [0, 0, 1, 1], [], []>} : vector<256x32xbf16>, vector<32x4xbf16>, vector<256x4xf32> -> vector<256x4xf32>
    %c0_31 = arith.constant 0 : index
    %c0_32 = arith.constant 0 : index
    %109 = vector.load %arg8[%c0_31, %c0_32] : memref<1x4xf32, #tpu.memory_space<vmem>>, vector<1x4xf32>
    %110 = vector.broadcast %109 : vector<1x4xf32> to vector<256x4xf32>
    %111 = arith.addf %108, %110 : vector<256x4xf32>
    %c0_33 = arith.constant 0 : index
    %c0_34 = arith.constant 0 : index
    %c0_35 = arith.constant 0 : index
    %112 = vector.load %arg2[%c0_33, %c0_34, %c0_35] : memref<1x256x4xf32, #tpu.memory_space<vmem>>, vector<1x256x4xf32>
    %113 = vector.shape_cast %112 : vector<1x256x4xf32> to vector<256x4xf32>
    %114 = tpu.concatenate %111, %113 in 1 : vector<256x4xf32>, vector<256x4xf32> -> vector<256x8xf32>
    %c0_36 = arith.constant 0 : index
    %c0_37 = arith.constant 0 : index
    %115 = vector.load %arg9[%c0_36, %c0_37] : memref<72x32xbf16, #tpu.memory_space<vmem>>, vector<72x32xbf16>
    %c0_38 = arith.constant 0 : index
    %c0_39 = arith.constant 0 : index
    %116 = vector.load %arg10[%c0_38, %c0_39] : memref<1x32xf32, #tpu.memory_space<vmem>>, vector<1x32xf32>
    %c0_40 = arith.constant 0 : index
    %c0_41 = arith.constant 0 : index
    %117 = vector.load %arg11[%c0_40, %c0_41] : memref<32x2xbf16, #tpu.memory_space<vmem>>, vector<32x2xbf16>
    %c0_42 = arith.constant 0 : index
    %c0_43 = arith.constant 0 : index
    %118 = vector.load %arg12[%c0_42, %c0_43] : memref<2x32xbf16, #tpu.memory_space<vmem>>, vector<2x32xbf16>
    %c0_44 = arith.constant 0 : index
    %c0_45 = arith.constant 0 : index
    %119 = vector.load %arg13[%c0_44, %c0_45] : memref<98x1xbf16, #tpu.memory_space<vmem>>, vector<98x1xbf16>
    %120 = vector.extract_strided_slice %114 {offsets = [0, 0], sizes = [16, 8], strides = [1, 1]} : vector<256x8xf32> to vector<16x8xf32>
    %121 = vector.extract_strided_slice %114 {offsets = [240, 0], sizes = [16, 8], strides = [1, 1]} : vector<256x8xf32> to vector<16x8xf32>
    %122 = tpu.concatenate %120, %114, %121 in 0 : vector<16x8xf32>, vector<256x8xf32>, vector<16x8xf32> -> vector<288x8xf32>
    %123 = tpu.iota {dimensions = array<i32: 0>} : vector<288x1xi32>
    %c16_i32_46 = arith.constant 16 : i32
    %c0_i32_47 = arith.constant 0 : i32
    %124 = arith.cmpi eq, %c16_i32_46, %c0_i32_47 : i32
    %c1_i32_48 = arith.constant 1 : i32
    %125 = arith.select %124, %c1_i32_48, %c16_i32_46 : i32
    %126 = vector.broadcast %125 : i32 to vector<288x1xi32>
    %127 = arith.remsi %123, %126 : vector<288x1xi32>
    %c0_i32_49 = arith.constant 0 : i32
    %128 = vector.broadcast %c0_i32_49 : i32 to vector<288x1xi32>
    %129 = arith.cmpi ne, %127, %128 : vector<288x1xi32>
    %c0_i32_50 = arith.constant 0 : i32
    %130 = vector.broadcast %c0_i32_50 : i32 to vector<288x1xi32>
    %131 = arith.cmpi slt, %127, %130 : vector<288x1xi32>
    %c0_i32_51 = arith.constant 0 : i32
    %132 = arith.cmpi slt, %125, %c0_i32_51 : i32
    %133 = vector.broadcast %132 : i1 to vector<288x1xi1>
    %134 = vector.broadcast %133 : vector<288x1xi1> to vector<288x1xi1>
    %135 = arith.xori %131, %134 : vector<288x1xi1>
    %136 = arith.andi %135, %129 : vector<288x1xi1>
    %137 = vector.broadcast %125 : i32 to vector<288x1xi32>
    %138 = arith.addi %127, %137 : vector<288x1xi32>
    %139 = arith.select %136, %138, %127 : vector<288x1xi1>, vector<288x1xi32>
    %c0_i32_52 = arith.constant 0 : i32
    %140 = vector.broadcast %c0_i32_52 : i32 to vector<288x1xi32>
    %141 = arith.cmpi eq, %139, %140 : vector<288x1xi32>
    %c1_i32_53 = arith.constant 1 : i32
    %142 = tpu.dynamic_rotate %122 by %c1_i32_53 dim 0 : vector<288x8xf32>, i32 -> vector<288x8xf32>
    %143 = vector.shape_cast %141 : vector<288x1xi1> to vector<288x1xi1>
    %144 = vector.broadcast %143 : vector<288x1xi1> to vector<288x8xi1>
    %145 = arith.select %144, %122, %142 : vector<288x8xi1>, vector<288x8xf32>
    %c15_i32_54 = arith.constant 15 : i32
    %146 = vector.broadcast %c15_i32_54 : i32 to vector<288x1xi32>
    %147 = arith.cmpi eq, %139, %146 : vector<288x1xi32>
    %c287_i32_55 = arith.constant 287 : i32
    %148 = tpu.dynamic_rotate %122 by %c287_i32_55 dim 0 : vector<288x8xf32>, i32 -> vector<288x8xf32>
    %149 = vector.shape_cast %147 : vector<288x1xi1> to vector<288x1xi1>
    %150 = vector.broadcast %149 : vector<288x1xi1> to vector<288x8xi1>
    %151 = arith.select %150, %122, %148 : vector<288x8xi1>, vector<288x8xf32>
    %152 = arith.truncf %145 : vector<288x8xf32> to vector<288x8xbf16>
    %153 = arith.truncf %122 : vector<288x8xf32> to vector<288x8xbf16>
    %154 = arith.truncf %151 : vector<288x8xf32> to vector<288x8xbf16>
    %155 = vector.extract_strided_slice %152 {offsets = [0, 0], sizes = [256, 8], strides = [1, 1]} : vector<288x8xbf16> to vector<256x8xbf16>
    %156 = vector.extract_strided_slice %153 {offsets = [0, 0], sizes = [256, 8], strides = [1, 1]} : vector<288x8xbf16> to vector<256x8xbf16>
    %157 = vector.extract_strided_slice %154 {offsets = [0, 0], sizes = [256, 8], strides = [1, 1]} : vector<288x8xbf16> to vector<256x8xbf16>
    %158 = vector.extract_strided_slice %152 {offsets = [16, 0], sizes = [256, 8], strides = [1, 1]} : vector<288x8xbf16> to vector<256x8xbf16>
    %159 = vector.extract_strided_slice %153 {offsets = [16, 0], sizes = [256, 8], strides = [1, 1]} : vector<288x8xbf16> to vector<256x8xbf16>
    %160 = vector.extract_strided_slice %154 {offsets = [16, 0], sizes = [256, 8], strides = [1, 1]} : vector<288x8xbf16> to vector<256x8xbf16>
    %161 = vector.extract_strided_slice %152 {offsets = [32, 0], sizes = [256, 8], strides = [1, 1]} : vector<288x8xbf16> to vector<256x8xbf16>
    %162 = vector.extract_strided_slice %153 {offsets = [32, 0], sizes = [256, 8], strides = [1, 1]} : vector<288x8xbf16> to vector<256x8xbf16>
    %163 = vector.extract_strided_slice %154 {offsets = [32, 0], sizes = [256, 8], strides = [1, 1]} : vector<288x8xbf16> to vector<256x8xbf16>
    %164 = tpu.concatenate %155, %156, %157, %158, %159, %160, %161, %162, %163 in 1 : vector<256x8xbf16>, vector<256x8xbf16>, vector<256x8xbf16>, vector<256x8xbf16>, vector<256x8xbf16>, vector<256x8xbf16>, vector<256x8xbf16>, vector<256x8xbf16>, vector<256x8xbf16> -> vector<256x72xbf16>
    %cst_56 = arith.constant dense<0.000000e+00> : vector<256x32xf32>
    %165 = tpu.matmul %164, %115, %cst_56 {dimension_numbers = #tpu.dot_dimension_numbers<[1], [0], [0], [1], [0, 0, 1, 1], [], []>} : vector<256x72xbf16>, vector<72x32xbf16>, vector<256x32xf32> -> vector<256x32xf32>
    %166 = vector.broadcast %116 : vector<1x32xf32> to vector<256x32xf32>
    %167 = arith.addf %165, %166 : vector<256x32xf32>
    %cst_57 = arith.constant 0.000000e+00 : f32
    %168 = vector.broadcast %cst_57 : f32 to vector<256x32xf32>
    %169 = arith.maximumf %167, %168 : vector<256x32xf32>
    %cst_58 = arith.constant dense<0.000000e+00> : vector<32xf32>
    %170 = vector.multi_reduction <add>, %169, %cst_58 [0] : vector<256x32xf32> to vector<32xf32>
    %171 = vector.shape_cast %170 : vector<32xf32> to vector<1x32xf32>
    %cst_59 = arith.constant 2.560000e+02 : f32
    %172 = vector.broadcast %cst_59 : f32 to vector<1x32xf32>
    %173 = arith.divf %171, %172 : vector<1x32xf32>
    %cst_60 = arith.constant dense<0xFF800000> : vector<32xf32>
    %174 = vector.multi_reduction <maximumf>, %169, %cst_60 [0] : vector<256x32xf32> to vector<32xf32>
    %175 = vector.shape_cast %174 : vector<32xf32> to vector<1x32xf32>
    %176 = tpu.concatenate %173, %175 in 0 : vector<1x32xf32>, vector<1x32xf32> -> vector<2x32xf32>
    %177 = arith.truncf %176 : vector<2x32xf32> to vector<2x32xbf16>
    %cst_61 = arith.constant dense<0.000000e+00> : vector<2x2xf32>
    %178 = tpu.matmul %177, %117, %cst_61 {dimension_numbers = #tpu.dot_dimension_numbers<[1], [0], [0], [1], [0, 0, 1, 1], [], []>} : vector<2x32xbf16>, vector<32x2xbf16>, vector<2x2xf32> -> vector<2x2xf32>
    %cst_62 = arith.constant 0.000000e+00 : f32
    %179 = vector.broadcast %cst_62 : f32 to vector<2x2xf32>
    %180 = arith.maximumf %178, %179 : vector<2x2xf32>
    %181 = arith.truncf %180 : vector<2x2xf32> to vector<2x2xbf16>
    %cst_63 = arith.constant dense<0.000000e+00> : vector<2x32xf32>
    %182 = tpu.matmul %181, %118, %cst_63 {dimension_numbers = #tpu.dot_dimension_numbers<[1], [0], [0], [1], [0, 0, 1, 1], [], []>} : vector<2x2xbf16>, vector<2x32xbf16>, vector<2x32xf32> -> vector<2x32xf32>
    %183 = vector.extract_strided_slice %182 {offsets = [0, 0], sizes = [1, 32], strides = [1, 1]} : vector<2x32xf32> to vector<1x32xf32>
    %184 = vector.extract_strided_slice %182 {offsets = [1, 0], sizes = [1, 32], strides = [1, 1]} : vector<2x32xf32> to vector<1x32xf32>
    %185 = arith.addf %183, %184 : vector<1x32xf32>
    %cst_64 = arith.constant 0.000000e+00 : f32
    %186 = vector.broadcast %cst_64 : f32 to vector<1x32xf32>
    %187 = arith.subf %186, %185 : vector<1x32xf32>
    %188 = math.exp %187 : vector<1x32xf32>
    %cst_65 = arith.constant 1.000000e+00 : f32
    %189 = vector.broadcast %cst_65 : f32 to vector<1x32xf32>
    %190 = arith.addf %189, %188 : vector<1x32xf32>
    %cst_66 = arith.constant 1.000000e+00 : f32
    %191 = vector.broadcast %cst_66 : f32 to vector<1x32xf32>
    %192 = arith.divf %191, %190 : vector<1x32xf32>
    %193 = vector.broadcast %192 : vector<1x32xf32> to vector<256x32xf32>
    %194 = arith.mulf %169, %193 : vector<256x32xf32>
    %cst_67 = arith.constant dense<0.000000e+00> : vector<256xf32>
    %195 = vector.multi_reduction <add>, %194, %cst_67 [1] : vector<256x32xf32> to vector<256xf32>
    %196 = vector.shape_cast %195 : vector<256xf32> to vector<256x1xf32>
    %cst_68 = arith.constant 3.200000e+01 : f32
    %197 = vector.broadcast %cst_68 : f32 to vector<256x1xf32>
    %198 = arith.divf %196, %197 : vector<256x1xf32>
    %cst_69 = arith.constant dense<0xFF800000> : vector<256xf32>
    %199 = vector.multi_reduction <maximumf>, %194, %cst_69 [1] : vector<256x32xf32> to vector<256xf32>
    %200 = vector.shape_cast %199 : vector<256xf32> to vector<256x1xf32>
    %201 = tpu.concatenate %198, %200 in 1 : vector<256x1xf32>, vector<256x1xf32> -> vector<256x2xf32>
    %cst_70 = arith.constant 0.000000e+00 : f32
    %202 = vector.broadcast %cst_70 : f32 to vector<48x2xf32>
    %203 = tpu.concatenate %202, %201, %202 in 0 : vector<48x2xf32>, vector<256x2xf32>, vector<48x2xf32> -> vector<352x2xf32>
    %204 = tpu.iota {dimensions = array<i32: 0>} : vector<352x1xi32>
    %c16_i32_71 = arith.constant 16 : i32
    %c0_i32_72 = arith.constant 0 : i32
    %205 = arith.cmpi eq, %c16_i32_71, %c0_i32_72 : i32
    %c1_i32_73 = arith.constant 1 : i32
    %206 = arith.select %205, %c1_i32_73, %c16_i32_71 : i32
    %207 = vector.broadcast %206 : i32 to vector<352x1xi32>
    %208 = arith.remsi %204, %207 : vector<352x1xi32>
    %c0_i32_74 = arith.constant 0 : i32
    %209 = vector.broadcast %c0_i32_74 : i32 to vector<352x1xi32>
    %210 = arith.cmpi ne, %208, %209 : vector<352x1xi32>
    %c0_i32_75 = arith.constant 0 : i32
    %211 = vector.broadcast %c0_i32_75 : i32 to vector<352x1xi32>
    %212 = arith.cmpi slt, %208, %211 : vector<352x1xi32>
    %c0_i32_76 = arith.constant 0 : i32
    %213 = arith.cmpi slt, %206, %c0_i32_76 : i32
    %214 = vector.broadcast %213 : i1 to vector<352x1xi1>
    %215 = vector.broadcast %214 : vector<352x1xi1> to vector<352x1xi1>
    %216 = arith.xori %212, %215 : vector<352x1xi1>
    %217 = arith.andi %216, %210 : vector<352x1xi1>
    %218 = vector.broadcast %206 : i32 to vector<352x1xi32>
    %219 = arith.addi %208, %218 : vector<352x1xi32>
    %220 = arith.select %217, %219, %208 : vector<352x1xi1>, vector<352x1xi32>
    %c3_i32 = arith.constant 3 : i32
    %221 = tpu.dynamic_rotate %203 by %c3_i32 dim 0 : vector<352x2xf32>, i32 -> vector<352x2xf32>
    %c3_i32_77 = arith.constant 3 : i32
    %222 = vector.broadcast %c3_i32_77 : i32 to vector<352x1xi32>
    %223 = arith.cmpi slt, %220, %222 : vector<352x1xi32>
    %cst_78 = arith.constant 0.000000e+00 : f32
    %224 = vector.broadcast %cst_78 : f32 to vector<352x2xf32>
    %225 = vector.shape_cast %223 : vector<352x1xi1> to vector<352x1xi1>
    %226 = vector.broadcast %225 : vector<352x1xi1> to vector<352x2xi1>
    %227 = arith.select %226, %224, %221 : vector<352x2xi1>, vector<352x2xf32>
    %c2_i32 = arith.constant 2 : i32
    %228 = tpu.dynamic_rotate %203 by %c2_i32 dim 0 : vector<352x2xf32>, i32 -> vector<352x2xf32>
    %c2_i32_79 = arith.constant 2 : i32
    %229 = vector.broadcast %c2_i32_79 : i32 to vector<352x1xi32>
    %230 = arith.cmpi slt, %220, %229 : vector<352x1xi32>
    %cst_80 = arith.constant 0.000000e+00 : f32
    %231 = vector.broadcast %cst_80 : f32 to vector<352x2xf32>
    %232 = vector.shape_cast %230 : vector<352x1xi1> to vector<352x1xi1>
    %233 = vector.broadcast %232 : vector<352x1xi1> to vector<352x2xi1>
    %234 = arith.select %233, %231, %228 : vector<352x2xi1>, vector<352x2xf32>
    %c1_i32_81 = arith.constant 1 : i32
    %235 = tpu.dynamic_rotate %203 by %c1_i32_81 dim 0 : vector<352x2xf32>, i32 -> vector<352x2xf32>
    %c1_i32_82 = arith.constant 1 : i32
    %236 = vector.broadcast %c1_i32_82 : i32 to vector<352x1xi32>
    %237 = arith.cmpi slt, %220, %236 : vector<352x1xi32>
    %cst_83 = arith.constant 0.000000e+00 : f32
    %238 = vector.broadcast %cst_83 : f32 to vector<352x2xf32>
    %239 = vector.shape_cast %237 : vector<352x1xi1> to vector<352x1xi1>
    %240 = vector.broadcast %239 : vector<352x1xi1> to vector<352x2xi1>
    %241 = arith.select %240, %238, %235 : vector<352x2xi1>, vector<352x2xf32>
    %c351_i32 = arith.constant 351 : i32
    %242 = tpu.dynamic_rotate %203 by %c351_i32 dim 0 : vector<352x2xf32>, i32 -> vector<352x2xf32>
    %c15_i32_84 = arith.constant 15 : i32
    %243 = vector.broadcast %c15_i32_84 : i32 to vector<352x1xi32>
    %244 = arith.cmpi sge, %220, %243 : vector<352x1xi32>
    %cst_85 = arith.constant 0.000000e+00 : f32
    %245 = vector.broadcast %cst_85 : f32 to vector<352x2xf32>
    %246 = vector.shape_cast %244 : vector<352x1xi1> to vector<352x1xi1>
    %247 = vector.broadcast %246 : vector<352x1xi1> to vector<352x2xi1>
    %248 = arith.select %247, %245, %242 : vector<352x2xi1>, vector<352x2xf32>
    %c350_i32 = arith.constant 350 : i32
    %249 = tpu.dynamic_rotate %203 by %c350_i32 dim 0 : vector<352x2xf32>, i32 -> vector<352x2xf32>
    %c14_i32 = arith.constant 14 : i32
    %250 = vector.broadcast %c14_i32 : i32 to vector<352x1xi32>
    %251 = arith.cmpi sge, %220, %250 : vector<352x1xi32>
    %cst_86 = arith.constant 0.000000e+00 : f32
    %252 = vector.broadcast %cst_86 : f32 to vector<352x2xf32>
    %253 = vector.shape_cast %251 : vector<352x1xi1> to vector<352x1xi1>
    %254 = vector.broadcast %253 : vector<352x1xi1> to vector<352x2xi1>
    %255 = arith.select %254, %252, %249 : vector<352x2xi1>, vector<352x2xf32>
    %c349_i32 = arith.constant 349 : i32
    %256 = tpu.dynamic_rotate %203 by %c349_i32 dim 0 : vector<352x2xf32>, i32 -> vector<352x2xf32>
    %c13_i32 = arith.constant 13 : i32
    %257 = vector.broadcast %c13_i32 : i32 to vector<352x1xi32>
    %258 = arith.cmpi sge, %220, %257 : vector<352x1xi32>
    %cst_87 = arith.constant 0.000000e+00 : f32
    %259 = vector.broadcast %cst_87 : f32 to vector<352x2xf32>
    %260 = vector.shape_cast %258 : vector<352x1xi1> to vector<352x1xi1>
    %261 = vector.broadcast %260 : vector<352x1xi1> to vector<352x2xi1>
    %262 = arith.select %261, %259, %256 : vector<352x2xi1>, vector<352x2xf32>
    %263 = tpu.concatenate %227, %234, %241, %203, %248, %255, %262 in 1 : vector<352x2xf32>, vector<352x2xf32>, vector<352x2xf32>, vector<352x2xf32>, vector<352x2xf32>, vector<352x2xf32>, vector<352x2xf32> -> vector<352x14xf32>
    %264 = arith.truncf %263 : vector<352x14xf32> to vector<352x14xbf16>
    %265 = vector.extract_strided_slice %264 {offsets = [0, 0], sizes = [256, 14], strides = [1, 1]} : vector<352x14xbf16> to vector<256x14xbf16>
    %266 = vector.extract_strided_slice %264 {offsets = [16, 0], sizes = [256, 14], strides = [1, 1]} : vector<352x14xbf16> to vector<256x14xbf16>
    %267 = vector.extract_strided_slice %264 {offsets = [32, 0], sizes = [256, 14], strides = [1, 1]} : vector<352x14xbf16> to vector<256x14xbf16>
    %268 = vector.extract_strided_slice %264 {offsets = [48, 0], sizes = [256, 14], strides = [1, 1]} : vector<352x14xbf16> to vector<256x14xbf16>
    %269 = vector.extract_strided_slice %264 {offsets = [64, 0], sizes = [256, 14], strides = [1, 1]} : vector<352x14xbf16> to vector<256x14xbf16>
    %270 = vector.extract_strided_slice %264 {offsets = [80, 0], sizes = [256, 14], strides = [1, 1]} : vector<352x14xbf16> to vector<256x14xbf16>
    %271 = vector.extract_strided_slice %264 {offsets = [96, 0], sizes = [256, 14], strides = [1, 1]} : vector<352x14xbf16> to vector<256x14xbf16>
    %272 = tpu.concatenate %265, %266, %267, %268, %269, %270, %271 in 1 : vector<256x14xbf16>, vector<256x14xbf16>, vector<256x14xbf16>, vector<256x14xbf16>, vector<256x14xbf16>, vector<256x14xbf16>, vector<256x14xbf16> -> vector<256x98xbf16>
    %cst_88 = arith.constant dense<0.000000e+00> : vector<256x1xf32>
    %273 = tpu.matmul %272, %119, %cst_88 {dimension_numbers = #tpu.dot_dimension_numbers<[1], [0], [0], [1], [0, 0, 1, 1], [], []>} : vector<256x98xbf16>, vector<98x1xbf16>, vector<256x1xf32> -> vector<256x1xf32>
    %cst_89 = arith.constant 0.000000e+00 : f32
    %274 = vector.broadcast %cst_89 : f32 to vector<256x1xf32>
    %275 = arith.subf %274, %273 : vector<256x1xf32>
    %276 = math.exp %275 : vector<256x1xf32>
    %cst_90 = arith.constant 1.000000e+00 : f32
    %277 = vector.broadcast %cst_90 : f32 to vector<256x1xf32>
    %278 = arith.addf %277, %276 : vector<256x1xf32>
    %cst_91 = arith.constant 1.000000e+00 : f32
    %279 = vector.broadcast %cst_91 : f32 to vector<256x1xf32>
    %280 = arith.divf %279, %278 : vector<256x1xf32>
    %281 = vector.broadcast %280 : vector<256x1xf32> to vector<256x32xf32>
    %282 = arith.mulf %194, %281 : vector<256x32xf32>
    %c0_92 = arith.constant 0 : index
    %c0_93 = arith.constant 0 : index
    %283 = vector.load %arg14[%c0_92, %c0_93] : memref<288x64xbf16, #tpu.memory_space<vmem>>, vector<288x64xbf16>
    %c0_94 = arith.constant 0 : index
    %c0_95 = arith.constant 0 : index
    %284 = vector.load %arg15[%c0_94, %c0_95] : memref<1x64xf32, #tpu.memory_space<vmem>>, vector<1x64xf32>
    %c0_96 = arith.constant 0 : index
    %c0_97 = arith.constant 0 : index
    %285 = vector.load %arg16[%c0_96, %c0_97] : memref<64x4xbf16, #tpu.memory_space<vmem>>, vector<64x4xbf16>
    %c0_98 = arith.constant 0 : index
    %c0_99 = arith.constant 0 : index
    %286 = vector.load %arg17[%c0_98, %c0_99] : memref<4x64xbf16, #tpu.memory_space<vmem>>, vector<4x64xbf16>
    %c0_100 = arith.constant 0 : index
    %c0_101 = arith.constant 0 : index
    %287 = vector.load %arg18[%c0_100, %c0_101] : memref<98x1xbf16, #tpu.memory_space<vmem>>, vector<98x1xbf16>
    %288 = vector.extract_strided_slice %282 {offsets = [0, 0], sizes = [16, 32], strides = [1, 1]} : vector<256x32xf32> to vector<16x32xf32>
    %289 = vector.extract_strided_slice %282 {offsets = [240, 0], sizes = [16, 32], strides = [1, 1]} : vector<256x32xf32> to vector<16x32xf32>
    %290 = tpu.concatenate %288, %282, %289 in 0 : vector<16x32xf32>, vector<256x32xf32>, vector<16x32xf32> -> vector<288x32xf32>
    %291 = tpu.iota {dimensions = array<i32: 0>} : vector<288x1xi32>
    %c16_i32_102 = arith.constant 16 : i32
    %c0_i32_103 = arith.constant 0 : i32
    %292 = arith.cmpi eq, %c16_i32_102, %c0_i32_103 : i32
    %c1_i32_104 = arith.constant 1 : i32
    %293 = arith.select %292, %c1_i32_104, %c16_i32_102 : i32
    %294 = vector.broadcast %293 : i32 to vector<288x1xi32>
    %295 = arith.remsi %291, %294 : vector<288x1xi32>
    %c0_i32_105 = arith.constant 0 : i32
    %296 = vector.broadcast %c0_i32_105 : i32 to vector<288x1xi32>
    %297 = arith.cmpi ne, %295, %296 : vector<288x1xi32>
    %c0_i32_106 = arith.constant 0 : i32
    %298 = vector.broadcast %c0_i32_106 : i32 to vector<288x1xi32>
    %299 = arith.cmpi slt, %295, %298 : vector<288x1xi32>
    %c0_i32_107 = arith.constant 0 : i32
    %300 = arith.cmpi slt, %293, %c0_i32_107 : i32
    %301 = vector.broadcast %300 : i1 to vector<288x1xi1>
    %302 = vector.broadcast %301 : vector<288x1xi1> to vector<288x1xi1>
    %303 = arith.xori %299, %302 : vector<288x1xi1>
    %304 = arith.andi %303, %297 : vector<288x1xi1>
    %305 = vector.broadcast %293 : i32 to vector<288x1xi32>
    %306 = arith.addi %295, %305 : vector<288x1xi32>
    %307 = arith.select %304, %306, %295 : vector<288x1xi1>, vector<288x1xi32>
    %c0_i32_108 = arith.constant 0 : i32
    %308 = vector.broadcast %c0_i32_108 : i32 to vector<288x1xi32>
    %309 = arith.cmpi eq, %307, %308 : vector<288x1xi32>
    %c1_i32_109 = arith.constant 1 : i32
    %310 = tpu.dynamic_rotate %290 by %c1_i32_109 dim 0 : vector<288x32xf32>, i32 -> vector<288x32xf32>
    %311 = vector.shape_cast %309 : vector<288x1xi1> to vector<288x1xi1>
    %312 = vector.broadcast %311 : vector<288x1xi1> to vector<288x32xi1>
    %313 = arith.select %312, %290, %310 : vector<288x32xi1>, vector<288x32xf32>
    %c15_i32_110 = arith.constant 15 : i32
    %314 = vector.broadcast %c15_i32_110 : i32 to vector<288x1xi32>
    %315 = arith.cmpi eq, %307, %314 : vector<288x1xi32>
    %c287_i32_111 = arith.constant 287 : i32
    %316 = tpu.dynamic_rotate %290 by %c287_i32_111 dim 0 : vector<288x32xf32>, i32 -> vector<288x32xf32>
    %317 = vector.shape_cast %315 : vector<288x1xi1> to vector<288x1xi1>
    %318 = vector.broadcast %317 : vector<288x1xi1> to vector<288x32xi1>
    %319 = arith.select %318, %290, %316 : vector<288x32xi1>, vector<288x32xf32>
    %320 = arith.truncf %313 : vector<288x32xf32> to vector<288x32xbf16>
    %321 = arith.truncf %290 : vector<288x32xf32> to vector<288x32xbf16>
    %322 = arith.truncf %319 : vector<288x32xf32> to vector<288x32xbf16>
    %323 = vector.extract_strided_slice %320 {offsets = [0, 0], sizes = [256, 32], strides = [1, 1]} : vector<288x32xbf16> to vector<256x32xbf16>
    %324 = vector.extract_strided_slice %321 {offsets = [0, 0], sizes = [256, 32], strides = [1, 1]} : vector<288x32xbf16> to vector<256x32xbf16>
    %325 = vector.extract_strided_slice %322 {offsets = [0, 0], sizes = [256, 32], strides = [1, 1]} : vector<288x32xbf16> to vector<256x32xbf16>
    %326 = vector.extract_strided_slice %320 {offsets = [16, 0], sizes = [256, 32], strides = [1, 1]} : vector<288x32xbf16> to vector<256x32xbf16>
    %327 = vector.extract_strided_slice %321 {offsets = [16, 0], sizes = [256, 32], strides = [1, 1]} : vector<288x32xbf16> to vector<256x32xbf16>
    %328 = vector.extract_strided_slice %322 {offsets = [16, 0], sizes = [256, 32], strides = [1, 1]} : vector<288x32xbf16> to vector<256x32xbf16>
    %329 = vector.extract_strided_slice %320 {offsets = [32, 0], sizes = [256, 32], strides = [1, 1]} : vector<288x32xbf16> to vector<256x32xbf16>
    %330 = vector.extract_strided_slice %321 {offsets = [32, 0], sizes = [256, 32], strides = [1, 1]} : vector<288x32xbf16> to vector<256x32xbf16>
    %331 = vector.extract_strided_slice %322 {offsets = [32, 0], sizes = [256, 32], strides = [1, 1]} : vector<288x32xbf16> to vector<256x32xbf16>
    %332 = tpu.concatenate %323, %324, %325, %326, %327, %328, %329, %330, %331 in 1 : vector<256x32xbf16>, vector<256x32xbf16>, vector<256x32xbf16>, vector<256x32xbf16>, vector<256x32xbf16>, vector<256x32xbf16>, vector<256x32xbf16>, vector<256x32xbf16>, vector<256x32xbf16> -> vector<256x288xbf16>
    %cst_112 = arith.constant dense<0.000000e+00> : vector<256x64xf32>
    %333 = tpu.matmul %332, %283, %cst_112 {dimension_numbers = #tpu.dot_dimension_numbers<[1], [0], [0], [1], [0, 0, 1, 1], [], []>} : vector<256x288xbf16>, vector<288x64xbf16>, vector<256x64xf32> -> vector<256x64xf32>
    %334 = vector.broadcast %284 : vector<1x64xf32> to vector<256x64xf32>
    %335 = arith.addf %333, %334 : vector<256x64xf32>
    %cst_113 = arith.constant 0.000000e+00 : f32
    %336 = vector.broadcast %cst_113 : f32 to vector<256x64xf32>
    %337 = arith.maximumf %335, %336 : vector<256x64xf32>
    %cst_114 = arith.constant dense<0.000000e+00> : vector<64xf32>
    %338 = vector.multi_reduction <add>, %337, %cst_114 [0] : vector<256x64xf32> to vector<64xf32>
    %339 = vector.shape_cast %338 : vector<64xf32> to vector<1x64xf32>
    %cst_115 = arith.constant 2.560000e+02 : f32
    %340 = vector.broadcast %cst_115 : f32 to vector<1x64xf32>
    %341 = arith.divf %339, %340 : vector<1x64xf32>
    %cst_116 = arith.constant dense<0xFF800000> : vector<64xf32>
    %342 = vector.multi_reduction <maximumf>, %337, %cst_116 [0] : vector<256x64xf32> to vector<64xf32>
    %343 = vector.shape_cast %342 : vector<64xf32> to vector<1x64xf32>
    %344 = tpu.concatenate %341, %343 in 0 : vector<1x64xf32>, vector<1x64xf32> -> vector<2x64xf32>
    %345 = arith.truncf %344 : vector<2x64xf32> to vector<2x64xbf16>
    %cst_117 = arith.constant dense<0.000000e+00> : vector<2x4xf32>
    %346 = tpu.matmul %345, %285, %cst_117 {dimension_numbers = #tpu.dot_dimension_numbers<[1], [0], [0], [1], [0, 0, 1, 1], [], []>} : vector<2x64xbf16>, vector<64x4xbf16>, vector<2x4xf32> -> vector<2x4xf32>
    %cst_118 = arith.constant 0.000000e+00 : f32
    %347 = vector.broadcast %cst_118 : f32 to vector<2x4xf32>
    %348 = arith.maximumf %346, %347 : vector<2x4xf32>
    %349 = arith.truncf %348 : vector<2x4xf32> to vector<2x4xbf16>
    %cst_119 = arith.constant dense<0.000000e+00> : vector<2x64xf32>
    %350 = tpu.matmul %349, %286, %cst_119 {dimension_numbers = #tpu.dot_dimension_numbers<[1], [0], [0], [1], [0, 0, 1, 1], [], []>} : vector<2x4xbf16>, vector<4x64xbf16>, vector<2x64xf32> -> vector<2x64xf32>
    %351 = vector.extract_strided_slice %350 {offsets = [0, 0], sizes = [1, 64], strides = [1, 1]} : vector<2x64xf32> to vector<1x64xf32>
    %352 = vector.extract_strided_slice %350 {offsets = [1, 0], sizes = [1, 64], strides = [1, 1]} : vector<2x64xf32> to vector<1x64xf32>
    %353 = arith.addf %351, %352 : vector<1x64xf32>
    %cst_120 = arith.constant 0.000000e+00 : f32
    %354 = vector.broadcast %cst_120 : f32 to vector<1x64xf32>
    %355 = arith.subf %354, %353 : vector<1x64xf32>
    %356 = math.exp %355 : vector<1x64xf32>
    %cst_121 = arith.constant 1.000000e+00 : f32
    %357 = vector.broadcast %cst_121 : f32 to vector<1x64xf32>
    %358 = arith.addf %357, %356 : vector<1x64xf32>
    %cst_122 = arith.constant 1.000000e+00 : f32
    %359 = vector.broadcast %cst_122 : f32 to vector<1x64xf32>
    %360 = arith.divf %359, %358 : vector<1x64xf32>
    %361 = vector.broadcast %360 : vector<1x64xf32> to vector<256x64xf32>
    %362 = arith.mulf %337, %361 : vector<256x64xf32>
    %cst_123 = arith.constant dense<0.000000e+00> : vector<256xf32>
    %363 = vector.multi_reduction <add>, %362, %cst_123 [1] : vector<256x64xf32> to vector<256xf32>
    %364 = vector.shape_cast %363 : vector<256xf32> to vector<256x1xf32>
    %cst_124 = arith.constant 6.400000e+01 : f32
    %365 = vector.broadcast %cst_124 : f32 to vector<256x1xf32>
    %366 = arith.divf %364, %365 : vector<256x1xf32>
    %cst_125 = arith.constant dense<0xFF800000> : vector<256xf32>
    %367 = vector.multi_reduction <maximumf>, %362, %cst_125 [1] : vector<256x64xf32> to vector<256xf32>
    %368 = vector.shape_cast %367 : vector<256xf32> to vector<256x1xf32>
    %369 = tpu.concatenate %366, %368 in 1 : vector<256x1xf32>, vector<256x1xf32> -> vector<256x2xf32>
    %cst_126 = arith.constant 0.000000e+00 : f32
    %370 = vector.broadcast %cst_126 : f32 to vector<48x2xf32>
    %371 = tpu.concatenate %370, %369, %370 in 0 : vector<48x2xf32>, vector<256x2xf32>, vector<48x2xf32> -> vector<352x2xf32>
    %372 = tpu.iota {dimensions = array<i32: 0>} : vector<352x1xi32>
    %c16_i32_127 = arith.constant 16 : i32
    %c0_i32_128 = arith.constant 0 : i32
    %373 = arith.cmpi eq, %c16_i32_127, %c0_i32_128 : i32
    %c1_i32_129 = arith.constant 1 : i32
    %374 = arith.select %373, %c1_i32_129, %c16_i32_127 : i32
    %375 = vector.broadcast %374 : i32 to vector<352x1xi32>
    %376 = arith.remsi %372, %375 : vector<352x1xi32>
    %c0_i32_130 = arith.constant 0 : i32
    %377 = vector.broadcast %c0_i32_130 : i32 to vector<352x1xi32>
    %378 = arith.cmpi ne, %376, %377 : vector<352x1xi32>
    %c0_i32_131 = arith.constant 0 : i32
    %379 = vector.broadcast %c0_i32_131 : i32 to vector<352x1xi32>
    %380 = arith.cmpi slt, %376, %379 : vector<352x1xi32>
    %c0_i32_132 = arith.constant 0 : i32
    %381 = arith.cmpi slt, %374, %c0_i32_132 : i32
    %382 = vector.broadcast %381 : i1 to vector<352x1xi1>
    %383 = vector.broadcast %382 : vector<352x1xi1> to vector<352x1xi1>
    %384 = arith.xori %380, %383 : vector<352x1xi1>
    %385 = arith.andi %384, %378 : vector<352x1xi1>
    %386 = vector.broadcast %374 : i32 to vector<352x1xi32>
    %387 = arith.addi %376, %386 : vector<352x1xi32>
    %388 = arith.select %385, %387, %376 : vector<352x1xi1>, vector<352x1xi32>
    %c3_i32_133 = arith.constant 3 : i32
    %389 = tpu.dynamic_rotate %371 by %c3_i32_133 dim 0 : vector<352x2xf32>, i32 -> vector<352x2xf32>
    %c3_i32_134 = arith.constant 3 : i32
    %390 = vector.broadcast %c3_i32_134 : i32 to vector<352x1xi32>
    %391 = arith.cmpi slt, %388, %390 : vector<352x1xi32>
    %cst_135 = arith.constant 0.000000e+00 : f32
    %392 = vector.broadcast %cst_135 : f32 to vector<352x2xf32>
    %393 = vector.shape_cast %391 : vector<352x1xi1> to vector<352x1xi1>
    %394 = vector.broadcast %393 : vector<352x1xi1> to vector<352x2xi1>
    %395 = arith.select %394, %392, %389 : vector<352x2xi1>, vector<352x2xf32>
    %c2_i32_136 = arith.constant 2 : i32
    %396 = tpu.dynamic_rotate %371 by %c2_i32_136 dim 0 : vector<352x2xf32>, i32 -> vector<352x2xf32>
    %c2_i32_137 = arith.constant 2 : i32
    %397 = vector.broadcast %c2_i32_137 : i32 to vector<352x1xi32>
    %398 = arith.cmpi slt, %388, %397 : vector<352x1xi32>
    %cst_138 = arith.constant 0.000000e+00 : f32
    %399 = vector.broadcast %cst_138 : f32 to vector<352x2xf32>
    %400 = vector.shape_cast %398 : vector<352x1xi1> to vector<352x1xi1>
    %401 = vector.broadcast %400 : vector<352x1xi1> to vector<352x2xi1>
    %402 = arith.select %401, %399, %396 : vector<352x2xi1>, vector<352x2xf32>
    %c1_i32_139 = arith.constant 1 : i32
    %403 = tpu.dynamic_rotate %371 by %c1_i32_139 dim 0 : vector<352x2xf32>, i32 -> vector<352x2xf32>
    %c1_i32_140 = arith.constant 1 : i32
    %404 = vector.broadcast %c1_i32_140 : i32 to vector<352x1xi32>
    %405 = arith.cmpi slt, %388, %404 : vector<352x1xi32>
    %cst_141 = arith.constant 0.000000e+00 : f32
    %406 = vector.broadcast %cst_141 : f32 to vector<352x2xf32>
    %407 = vector.shape_cast %405 : vector<352x1xi1> to vector<352x1xi1>
    %408 = vector.broadcast %407 : vector<352x1xi1> to vector<352x2xi1>
    %409 = arith.select %408, %406, %403 : vector<352x2xi1>, vector<352x2xf32>
    %c351_i32_142 = arith.constant 351 : i32
    %410 = tpu.dynamic_rotate %371 by %c351_i32_142 dim 0 : vector<352x2xf32>, i32 -> vector<352x2xf32>
    %c15_i32_143 = arith.constant 15 : i32
    %411 = vector.broadcast %c15_i32_143 : i32 to vector<352x1xi32>
    %412 = arith.cmpi sge, %388, %411 : vector<352x1xi32>
    %cst_144 = arith.constant 0.000000e+00 : f32
    %413 = vector.broadcast %cst_144 : f32 to vector<352x2xf32>
    %414 = vector.shape_cast %412 : vector<352x1xi1> to vector<352x1xi1>
    %415 = vector.broadcast %414 : vector<352x1xi1> to vector<352x2xi1>
    %416 = arith.select %415, %413, %410 : vector<352x2xi1>, vector<352x2xf32>
    %c350_i32_145 = arith.constant 350 : i32
    %417 = tpu.dynamic_rotate %371 by %c350_i32_145 dim 0 : vector<352x2xf32>, i32 -> vector<352x2xf32>
    %c14_i32_146 = arith.constant 14 : i32
    %418 = vector.broadcast %c14_i32_146 : i32 to vector<352x1xi32>
    %419 = arith.cmpi sge, %388, %418 : vector<352x1xi32>
    %cst_147 = arith.constant 0.000000e+00 : f32
    %420 = vector.broadcast %cst_147 : f32 to vector<352x2xf32>
    %421 = vector.shape_cast %419 : vector<352x1xi1> to vector<352x1xi1>
    %422 = vector.broadcast %421 : vector<352x1xi1> to vector<352x2xi1>
    %423 = arith.select %422, %420, %417 : vector<352x2xi1>, vector<352x2xf32>
    %c349_i32_148 = arith.constant 349 : i32
    %424 = tpu.dynamic_rotate %371 by %c349_i32_148 dim 0 : vector<352x2xf32>, i32 -> vector<352x2xf32>
    %c13_i32_149 = arith.constant 13 : i32
    %425 = vector.broadcast %c13_i32_149 : i32 to vector<352x1xi32>
    %426 = arith.cmpi sge, %388, %425 : vector<352x1xi32>
    %cst_150 = arith.constant 0.000000e+00 : f32
    %427 = vector.broadcast %cst_150 : f32 to vector<352x2xf32>
    %428 = vector.shape_cast %426 : vector<352x1xi1> to vector<352x1xi1>
    %429 = vector.broadcast %428 : vector<352x1xi1> to vector<352x2xi1>
    %430 = arith.select %429, %427, %424 : vector<352x2xi1>, vector<352x2xf32>
    %431 = tpu.concatenate %395, %402, %409, %371, %416, %423, %430 in 1 : vector<352x2xf32>, vector<352x2xf32>, vector<352x2xf32>, vector<352x2xf32>, vector<352x2xf32>, vector<352x2xf32>, vector<352x2xf32> -> vector<352x14xf32>
    %432 = arith.truncf %431 : vector<352x14xf32> to vector<352x14xbf16>
    %433 = vector.extract_strided_slice %432 {offsets = [0, 0], sizes = [256, 14], strides = [1, 1]} : vector<352x14xbf16> to vector<256x14xbf16>
    %434 = vector.extract_strided_slice %432 {offsets = [16, 0], sizes = [256, 14], strides = [1, 1]} : vector<352x14xbf16> to vector<256x14xbf16>
    %435 = vector.extract_strided_slice %432 {offsets = [32, 0], sizes = [256, 14], strides = [1, 1]} : vector<352x14xbf16> to vector<256x14xbf16>
    %436 = vector.extract_strided_slice %432 {offsets = [48, 0], sizes = [256, 14], strides = [1, 1]} : vector<352x14xbf16> to vector<256x14xbf16>
    %437 = vector.extract_strided_slice %432 {offsets = [64, 0], sizes = [256, 14], strides = [1, 1]} : vector<352x14xbf16> to vector<256x14xbf16>
    %438 = vector.extract_strided_slice %432 {offsets = [80, 0], sizes = [256, 14], strides = [1, 1]} : vector<352x14xbf16> to vector<256x14xbf16>
    %439 = vector.extract_strided_slice %432 {offsets = [96, 0], sizes = [256, 14], strides = [1, 1]} : vector<352x14xbf16> to vector<256x14xbf16>
    %440 = tpu.concatenate %433, %434, %435, %436, %437, %438, %439 in 1 : vector<256x14xbf16>, vector<256x14xbf16>, vector<256x14xbf16>, vector<256x14xbf16>, vector<256x14xbf16>, vector<256x14xbf16>, vector<256x14xbf16> -> vector<256x98xbf16>
    %cst_151 = arith.constant dense<0.000000e+00> : vector<256x1xf32>
    %441 = tpu.matmul %440, %287, %cst_151 {dimension_numbers = #tpu.dot_dimension_numbers<[1], [0], [0], [1], [0, 0, 1, 1], [], []>} : vector<256x98xbf16>, vector<98x1xbf16>, vector<256x1xf32> -> vector<256x1xf32>
    %cst_152 = arith.constant 0.000000e+00 : f32
    %442 = vector.broadcast %cst_152 : f32 to vector<256x1xf32>
    %443 = arith.subf %442, %441 : vector<256x1xf32>
    %444 = math.exp %443 : vector<256x1xf32>
    %cst_153 = arith.constant 1.000000e+00 : f32
    %445 = vector.broadcast %cst_153 : f32 to vector<256x1xf32>
    %446 = arith.addf %445, %444 : vector<256x1xf32>
    %cst_154 = arith.constant 1.000000e+00 : f32
    %447 = vector.broadcast %cst_154 : f32 to vector<256x1xf32>
    %448 = arith.divf %447, %446 : vector<256x1xf32>
    %449 = vector.broadcast %448 : vector<256x1xf32> to vector<256x64xf32>
    %450 = arith.mulf %362, %449 : vector<256x64xf32>
    %c0_155 = arith.constant 0 : index
    %c0_156 = arith.constant 0 : index
    %451 = vector.load %arg19[%c0_155, %c0_156] : memref<576x128xbf16, #tpu.memory_space<vmem>>, vector<576x128xbf16>
    %c0_157 = arith.constant 0 : index
    %c0_158 = arith.constant 0 : index
    %452 = vector.load %arg20[%c0_157, %c0_158] : memref<1x128xf32, #tpu.memory_space<vmem>>, vector<1x128xf32>
    %c0_159 = arith.constant 0 : index
    %c0_160 = arith.constant 0 : index
    %453 = vector.load %arg21[%c0_159, %c0_160] : memref<128x8xbf16, #tpu.memory_space<vmem>>, vector<128x8xbf16>
    %c0_161 = arith.constant 0 : index
    %c0_162 = arith.constant 0 : index
    %454 = vector.load %arg22[%c0_161, %c0_162] : memref<8x128xbf16, #tpu.memory_space<vmem>>, vector<8x128xbf16>
    %c0_163 = arith.constant 0 : index
    %c0_164 = arith.constant 0 : index
    %455 = vector.load %arg23[%c0_163, %c0_164] : memref<98x1xbf16, #tpu.memory_space<vmem>>, vector<98x1xbf16>
    %456 = vector.extract_strided_slice %450 {offsets = [0, 0], sizes = [16, 64], strides = [1, 1]} : vector<256x64xf32> to vector<16x64xf32>
    %457 = vector.extract_strided_slice %450 {offsets = [240, 0], sizes = [16, 64], strides = [1, 1]} : vector<256x64xf32> to vector<16x64xf32>
    %458 = tpu.concatenate %456, %450, %457 in 0 : vector<16x64xf32>, vector<256x64xf32>, vector<16x64xf32> -> vector<288x64xf32>
    %459 = tpu.iota {dimensions = array<i32: 0>} : vector<288x1xi32>
    %c16_i32_165 = arith.constant 16 : i32
    %c0_i32_166 = arith.constant 0 : i32
    %460 = arith.cmpi eq, %c16_i32_165, %c0_i32_166 : i32
    %c1_i32_167 = arith.constant 1 : i32
    %461 = arith.select %460, %c1_i32_167, %c16_i32_165 : i32
    %462 = vector.broadcast %461 : i32 to vector<288x1xi32>
    %463 = arith.remsi %459, %462 : vector<288x1xi32>
    %c0_i32_168 = arith.constant 0 : i32
    %464 = vector.broadcast %c0_i32_168 : i32 to vector<288x1xi32>
    %465 = arith.cmpi ne, %463, %464 : vector<288x1xi32>
    %c0_i32_169 = arith.constant 0 : i32
    %466 = vector.broadcast %c0_i32_169 : i32 to vector<288x1xi32>
    %467 = arith.cmpi slt, %463, %466 : vector<288x1xi32>
    %c0_i32_170 = arith.constant 0 : i32
    %468 = arith.cmpi slt, %461, %c0_i32_170 : i32
    %469 = vector.broadcast %468 : i1 to vector<288x1xi1>
    %470 = vector.broadcast %469 : vector<288x1xi1> to vector<288x1xi1>
    %471 = arith.xori %467, %470 : vector<288x1xi1>
    %472 = arith.andi %471, %465 : vector<288x1xi1>
    %473 = vector.broadcast %461 : i32 to vector<288x1xi32>
    %474 = arith.addi %463, %473 : vector<288x1xi32>
    %475 = arith.select %472, %474, %463 : vector<288x1xi1>, vector<288x1xi32>
    %c0_i32_171 = arith.constant 0 : i32
    %476 = vector.broadcast %c0_i32_171 : i32 to vector<288x1xi32>
    %477 = arith.cmpi eq, %475, %476 : vector<288x1xi32>
    %c1_i32_172 = arith.constant 1 : i32
    %478 = tpu.dynamic_rotate %458 by %c1_i32_172 dim 0 : vector<288x64xf32>, i32 -> vector<288x64xf32>
    %479 = vector.shape_cast %477 : vector<288x1xi1> to vector<288x1xi1>
    %480 = vector.broadcast %479 : vector<288x1xi1> to vector<288x64xi1>
    %481 = arith.select %480, %458, %478 : vector<288x64xi1>, vector<288x64xf32>
    %c15_i32_173 = arith.constant 15 : i32
    %482 = vector.broadcast %c15_i32_173 : i32 to vector<288x1xi32>
    %483 = arith.cmpi eq, %475, %482 : vector<288x1xi32>
    %c287_i32_174 = arith.constant 287 : i32
    %484 = tpu.dynamic_rotate %458 by %c287_i32_174 dim 0 : vector<288x64xf32>, i32 -> vector<288x64xf32>
    %485 = vector.shape_cast %483 : vector<288x1xi1> to vector<288x1xi1>
    %486 = vector.broadcast %485 : vector<288x1xi1> to vector<288x64xi1>
    %487 = arith.select %486, %458, %484 : vector<288x64xi1>, vector<288x64xf32>
    %488 = arith.truncf %481 : vector<288x64xf32> to vector<288x64xbf16>
    %489 = arith.truncf %458 : vector<288x64xf32> to vector<288x64xbf16>
    %490 = arith.truncf %487 : vector<288x64xf32> to vector<288x64xbf16>
    %491 = vector.extract_strided_slice %488 {offsets = [0, 0], sizes = [256, 64], strides = [1, 1]} : vector<288x64xbf16> to vector<256x64xbf16>
    %492 = vector.extract_strided_slice %489 {offsets = [0, 0], sizes = [256, 64], strides = [1, 1]} : vector<288x64xbf16> to vector<256x64xbf16>
    %493 = vector.extract_strided_slice %490 {offsets = [0, 0], sizes = [256, 64], strides = [1, 1]} : vector<288x64xbf16> to vector<256x64xbf16>
    %494 = vector.extract_strided_slice %488 {offsets = [16, 0], sizes = [256, 64], strides = [1, 1]} : vector<288x64xbf16> to vector<256x64xbf16>
    %495 = vector.extract_strided_slice %489 {offsets = [16, 0], sizes = [256, 64], strides = [1, 1]} : vector<288x64xbf16> to vector<256x64xbf16>
    %496 = vector.extract_strided_slice %490 {offsets = [16, 0], sizes = [256, 64], strides = [1, 1]} : vector<288x64xbf16> to vector<256x64xbf16>
    %497 = vector.extract_strided_slice %488 {offsets = [32, 0], sizes = [256, 64], strides = [1, 1]} : vector<288x64xbf16> to vector<256x64xbf16>
    %498 = vector.extract_strided_slice %489 {offsets = [32, 0], sizes = [256, 64], strides = [1, 1]} : vector<288x64xbf16> to vector<256x64xbf16>
    %499 = vector.extract_strided_slice %490 {offsets = [32, 0], sizes = [256, 64], strides = [1, 1]} : vector<288x64xbf16> to vector<256x64xbf16>
    %500 = tpu.concatenate %491, %492, %493, %494, %495, %496, %497, %498, %499 in 1 : vector<256x64xbf16>, vector<256x64xbf16>, vector<256x64xbf16>, vector<256x64xbf16>, vector<256x64xbf16>, vector<256x64xbf16>, vector<256x64xbf16>, vector<256x64xbf16>, vector<256x64xbf16> -> vector<256x576xbf16>
    %cst_175 = arith.constant dense<0.000000e+00> : vector<256x128xf32>
    %501 = tpu.matmul %500, %451, %cst_175 {dimension_numbers = #tpu.dot_dimension_numbers<[1], [0], [0], [1], [0, 0, 1, 1], [], []>} : vector<256x576xbf16>, vector<576x128xbf16>, vector<256x128xf32> -> vector<256x128xf32>
    %502 = vector.broadcast %452 : vector<1x128xf32> to vector<256x128xf32>
    %503 = arith.addf %501, %502 : vector<256x128xf32>
    %cst_176 = arith.constant 0.000000e+00 : f32
    %504 = vector.broadcast %cst_176 : f32 to vector<256x128xf32>
    %505 = arith.maximumf %503, %504 : vector<256x128xf32>
    %cst_177 = arith.constant dense<0.000000e+00> : vector<128xf32>
    %506 = vector.multi_reduction <add>, %505, %cst_177 [0] : vector<256x128xf32> to vector<128xf32>
    %507 = vector.shape_cast %506 : vector<128xf32> to vector<1x128xf32>
    %cst_178 = arith.constant 2.560000e+02 : f32
    %508 = vector.broadcast %cst_178 : f32 to vector<1x128xf32>
    %509 = arith.divf %507, %508 : vector<1x128xf32>
    %cst_179 = arith.constant dense<0xFF800000> : vector<128xf32>
    %510 = vector.multi_reduction <maximumf>, %505, %cst_179 [0] : vector<256x128xf32> to vector<128xf32>
    %511 = vector.shape_cast %510 : vector<128xf32> to vector<1x128xf32>
    %512 = tpu.concatenate %509, %511 in 0 : vector<1x128xf32>, vector<1x128xf32> -> vector<2x128xf32>
    %513 = arith.truncf %512 : vector<2x128xf32> to vector<2x128xbf16>
    %cst_180 = arith.constant dense<0.000000e+00> : vector<2x8xf32>
    %514 = tpu.matmul %513, %453, %cst_180 {dimension_numbers = #tpu.dot_dimension_numbers<[1], [0], [0], [1], [0, 0, 1, 1], [], []>} : vector<2x128xbf16>, vector<128x8xbf16>, vector<2x8xf32> -> vector<2x8xf32>
    %cst_181 = arith.constant 0.000000e+00 : f32
    %515 = vector.broadcast %cst_181 : f32 to vector<2x8xf32>
    %516 = arith.maximumf %514, %515 : vector<2x8xf32>
    %517 = arith.truncf %516 : vector<2x8xf32> to vector<2x8xbf16>
    %cst_182 = arith.constant dense<0.000000e+00> : vector<2x128xf32>
    %518 = tpu.matmul %517, %454, %cst_182 {dimension_numbers = #tpu.dot_dimension_numbers<[1], [0], [0], [1], [0, 0, 1, 1], [], []>} : vector<2x8xbf16>, vector<8x128xbf16>, vector<2x128xf32> -> vector<2x128xf32>
    %519 = vector.extract_strided_slice %518 {offsets = [0, 0], sizes = [1, 128], strides = [1, 1]} : vector<2x128xf32> to vector<1x128xf32>
    %520 = vector.extract_strided_slice %518 {offsets = [1, 0], sizes = [1, 128], strides = [1, 1]} : vector<2x128xf32> to vector<1x128xf32>
    %521 = arith.addf %519, %520 : vector<1x128xf32>
    %cst_183 = arith.constant 0.000000e+00 : f32
    %522 = vector.broadcast %cst_183 : f32 to vector<1x128xf32>
    %523 = arith.subf %522, %521 : vector<1x128xf32>
    %524 = math.exp %523 : vector<1x128xf32>
    %cst_184 = arith.constant 1.000000e+00 : f32
    %525 = vector.broadcast %cst_184 : f32 to vector<1x128xf32>
    %526 = arith.addf %525, %524 : vector<1x128xf32>
    %cst_185 = arith.constant 1.000000e+00 : f32
    %527 = vector.broadcast %cst_185 : f32 to vector<1x128xf32>
    %528 = arith.divf %527, %526 : vector<1x128xf32>
    %529 = vector.broadcast %528 : vector<1x128xf32> to vector<256x128xf32>
    %530 = arith.mulf %505, %529 : vector<256x128xf32>
    %cst_186 = arith.constant dense<0.000000e+00> : vector<256xf32>
    %531 = vector.multi_reduction <add>, %530, %cst_186 [1] : vector<256x128xf32> to vector<256xf32>
    %532 = vector.shape_cast %531 : vector<256xf32> to vector<256x1xf32>
    %cst_187 = arith.constant 1.280000e+02 : f32
    %533 = vector.broadcast %cst_187 : f32 to vector<256x1xf32>
    %534 = arith.divf %532, %533 : vector<256x1xf32>
    %cst_188 = arith.constant dense<0xFF800000> : vector<256xf32>
    %535 = vector.multi_reduction <maximumf>, %530, %cst_188 [1] : vector<256x128xf32> to vector<256xf32>
    %536 = vector.shape_cast %535 : vector<256xf32> to vector<256x1xf32>
    %537 = tpu.concatenate %534, %536 in 1 : vector<256x1xf32>, vector<256x1xf32> -> vector<256x2xf32>
    %cst_189 = arith.constant 0.000000e+00 : f32
    %538 = vector.broadcast %cst_189 : f32 to vector<48x2xf32>
    %539 = tpu.concatenate %538, %537, %538 in 0 : vector<48x2xf32>, vector<256x2xf32>, vector<48x2xf32> -> vector<352x2xf32>
    %540 = tpu.iota {dimensions = array<i32: 0>} : vector<352x1xi32>
    %c16_i32_190 = arith.constant 16 : i32
    %c0_i32_191 = arith.constant 0 : i32
    %541 = arith.cmpi eq, %c16_i32_190, %c0_i32_191 : i32
    %c1_i32_192 = arith.constant 1 : i32
    %542 = arith.select %541, %c1_i32_192, %c16_i32_190 : i32
    %543 = vector.broadcast %542 : i32 to vector<352x1xi32>
    %544 = arith.remsi %540, %543 : vector<352x1xi32>
    %c0_i32_193 = arith.constant 0 : i32
    %545 = vector.broadcast %c0_i32_193 : i32 to vector<352x1xi32>
    %546 = arith.cmpi ne, %544, %545 : vector<352x1xi32>
    %c0_i32_194 = arith.constant 0 : i32
    %547 = vector.broadcast %c0_i32_194 : i32 to vector<352x1xi32>
    %548 = arith.cmpi slt, %544, %547 : vector<352x1xi32>
    %c0_i32_195 = arith.constant 0 : i32
    %549 = arith.cmpi slt, %542, %c0_i32_195 : i32
    %550 = vector.broadcast %549 : i1 to vector<352x1xi1>
    %551 = vector.broadcast %550 : vector<352x1xi1> to vector<352x1xi1>
    %552 = arith.xori %548, %551 : vector<352x1xi1>
    %553 = arith.andi %552, %546 : vector<352x1xi1>
    %554 = vector.broadcast %542 : i32 to vector<352x1xi32>
    %555 = arith.addi %544, %554 : vector<352x1xi32>
    %556 = arith.select %553, %555, %544 : vector<352x1xi1>, vector<352x1xi32>
    %c3_i32_196 = arith.constant 3 : i32
    %557 = tpu.dynamic_rotate %539 by %c3_i32_196 dim 0 : vector<352x2xf32>, i32 -> vector<352x2xf32>
    %c3_i32_197 = arith.constant 3 : i32
    %558 = vector.broadcast %c3_i32_197 : i32 to vector<352x1xi32>
    %559 = arith.cmpi slt, %556, %558 : vector<352x1xi32>
    %cst_198 = arith.constant 0.000000e+00 : f32
    %560 = vector.broadcast %cst_198 : f32 to vector<352x2xf32>
    %561 = vector.shape_cast %559 : vector<352x1xi1> to vector<352x1xi1>
    %562 = vector.broadcast %561 : vector<352x1xi1> to vector<352x2xi1>
    %563 = arith.select %562, %560, %557 : vector<352x2xi1>, vector<352x2xf32>
    %c2_i32_199 = arith.constant 2 : i32
    %564 = tpu.dynamic_rotate %539 by %c2_i32_199 dim 0 : vector<352x2xf32>, i32 -> vector<352x2xf32>
    %c2_i32_200 = arith.constant 2 : i32
    %565 = vector.broadcast %c2_i32_200 : i32 to vector<352x1xi32>
    %566 = arith.cmpi slt, %556, %565 : vector<352x1xi32>
    %cst_201 = arith.constant 0.000000e+00 : f32
    %567 = vector.broadcast %cst_201 : f32 to vector<352x2xf32>
    %568 = vector.shape_cast %566 : vector<352x1xi1> to vector<352x1xi1>
    %569 = vector.broadcast %568 : vector<352x1xi1> to vector<352x2xi1>
    %570 = arith.select %569, %567, %564 : vector<352x2xi1>, vector<352x2xf32>
    %c1_i32_202 = arith.constant 1 : i32
    %571 = tpu.dynamic_rotate %539 by %c1_i32_202 dim 0 : vector<352x2xf32>, i32 -> vector<352x2xf32>
    %c1_i32_203 = arith.constant 1 : i32
    %572 = vector.broadcast %c1_i32_203 : i32 to vector<352x1xi32>
    %573 = arith.cmpi slt, %556, %572 : vector<352x1xi32>
    %cst_204 = arith.constant 0.000000e+00 : f32
    %574 = vector.broadcast %cst_204 : f32 to vector<352x2xf32>
    %575 = vector.shape_cast %573 : vector<352x1xi1> to vector<352x1xi1>
    %576 = vector.broadcast %575 : vector<352x1xi1> to vector<352x2xi1>
    %577 = arith.select %576, %574, %571 : vector<352x2xi1>, vector<352x2xf32>
    %c351_i32_205 = arith.constant 351 : i32
    %578 = tpu.dynamic_rotate %539 by %c351_i32_205 dim 0 : vector<352x2xf32>, i32 -> vector<352x2xf32>
    %c15_i32_206 = arith.constant 15 : i32
    %579 = vector.broadcast %c15_i32_206 : i32 to vector<352x1xi32>
    %580 = arith.cmpi sge, %556, %579 : vector<352x1xi32>
    %cst_207 = arith.constant 0.000000e+00 : f32
    %581 = vector.broadcast %cst_207 : f32 to vector<352x2xf32>
    %582 = vector.shape_cast %580 : vector<352x1xi1> to vector<352x1xi1>
    %583 = vector.broadcast %582 : vector<352x1xi1> to vector<352x2xi1>
    %584 = arith.select %583, %581, %578 : vector<352x2xi1>, vector<352x2xf32>
    %c350_i32_208 = arith.constant 350 : i32
    %585 = tpu.dynamic_rotate %539 by %c350_i32_208 dim 0 : vector<352x2xf32>, i32 -> vector<352x2xf32>
    %c14_i32_209 = arith.constant 14 : i32
    %586 = vector.broadcast %c14_i32_209 : i32 to vector<352x1xi32>
    %587 = arith.cmpi sge, %556, %586 : vector<352x1xi32>
    %cst_210 = arith.constant 0.000000e+00 : f32
    %588 = vector.broadcast %cst_210 : f32 to vector<352x2xf32>
    %589 = vector.shape_cast %587 : vector<352x1xi1> to vector<352x1xi1>
    %590 = vector.broadcast %589 : vector<352x1xi1> to vector<352x2xi1>
    %591 = arith.select %590, %588, %585 : vector<352x2xi1>, vector<352x2xf32>
    %c349_i32_211 = arith.constant 349 : i32
    %592 = tpu.dynamic_rotate %539 by %c349_i32_211 dim 0 : vector<352x2xf32>, i32 -> vector<352x2xf32>
    %c13_i32_212 = arith.constant 13 : i32
    %593 = vector.broadcast %c13_i32_212 : i32 to vector<352x1xi32>
    %594 = arith.cmpi sge, %556, %593 : vector<352x1xi32>
    %cst_213 = arith.constant 0.000000e+00 : f32
    %595 = vector.broadcast %cst_213 : f32 to vector<352x2xf32>
    %596 = vector.shape_cast %594 : vector<352x1xi1> to vector<352x1xi1>
    %597 = vector.broadcast %596 : vector<352x1xi1> to vector<352x2xi1>
    %598 = arith.select %597, %595, %592 : vector<352x2xi1>, vector<352x2xf32>
    %599 = tpu.concatenate %563, %570, %577, %539, %584, %591, %598 in 1 : vector<352x2xf32>, vector<352x2xf32>, vector<352x2xf32>, vector<352x2xf32>, vector<352x2xf32>, vector<352x2xf32>, vector<352x2xf32> -> vector<352x14xf32>
    %600 = arith.truncf %599 : vector<352x14xf32> to vector<352x14xbf16>
    %601 = vector.extract_strided_slice %600 {offsets = [0, 0], sizes = [256, 14], strides = [1, 1]} : vector<352x14xbf16> to vector<256x14xbf16>
    %602 = vector.extract_strided_slice %600 {offsets = [16, 0], sizes = [256, 14], strides = [1, 1]} : vector<352x14xbf16> to vector<256x14xbf16>
    %603 = vector.extract_strided_slice %600 {offsets = [32, 0], sizes = [256, 14], strides = [1, 1]} : vector<352x14xbf16> to vector<256x14xbf16>
    %604 = vector.extract_strided_slice %600 {offsets = [48, 0], sizes = [256, 14], strides = [1, 1]} : vector<352x14xbf16> to vector<256x14xbf16>
    %605 = vector.extract_strided_slice %600 {offsets = [64, 0], sizes = [256, 14], strides = [1, 1]} : vector<352x14xbf16> to vector<256x14xbf16>
    %606 = vector.extract_strided_slice %600 {offsets = [80, 0], sizes = [256, 14], strides = [1, 1]} : vector<352x14xbf16> to vector<256x14xbf16>
    %607 = vector.extract_strided_slice %600 {offsets = [96, 0], sizes = [256, 14], strides = [1, 1]} : vector<352x14xbf16> to vector<256x14xbf16>
    %608 = tpu.concatenate %601, %602, %603, %604, %605, %606, %607 in 1 : vector<256x14xbf16>, vector<256x14xbf16>, vector<256x14xbf16>, vector<256x14xbf16>, vector<256x14xbf16>, vector<256x14xbf16>, vector<256x14xbf16> -> vector<256x98xbf16>
    %cst_214 = arith.constant dense<0.000000e+00> : vector<256x1xf32>
    %609 = tpu.matmul %608, %455, %cst_214 {dimension_numbers = #tpu.dot_dimension_numbers<[1], [0], [0], [1], [0, 0, 1, 1], [], []>} : vector<256x98xbf16>, vector<98x1xbf16>, vector<256x1xf32> -> vector<256x1xf32>
    %cst_215 = arith.constant 0.000000e+00 : f32
    %610 = vector.broadcast %cst_215 : f32 to vector<256x1xf32>
    %611 = arith.subf %610, %609 : vector<256x1xf32>
    %612 = math.exp %611 : vector<256x1xf32>
    %cst_216 = arith.constant 1.000000e+00 : f32
    %613 = vector.broadcast %cst_216 : f32 to vector<256x1xf32>
    %614 = arith.addf %613, %612 : vector<256x1xf32>
    %cst_217 = arith.constant 1.000000e+00 : f32
    %615 = vector.broadcast %cst_217 : f32 to vector<256x1xf32>
    %616 = arith.divf %615, %614 : vector<256x1xf32>
    %617 = vector.broadcast %616 : vector<256x1xf32> to vector<256x128xf32>
    %618 = arith.mulf %530, %617 : vector<256x128xf32>
    %c0_218 = arith.constant 0 : index
    %c0_219 = arith.constant 0 : index
    %619 = vector.load %arg24[%c0_218, %c0_219] : memref<1152x64xbf16, #tpu.memory_space<vmem>>, vector<1152x64xbf16>
    %c0_220 = arith.constant 0 : index
    %c0_221 = arith.constant 0 : index
    %620 = vector.load %arg25[%c0_220, %c0_221] : memref<1x64xf32, #tpu.memory_space<vmem>>, vector<1x64xf32>
    %621 = vector.extract_strided_slice %618 {offsets = [0, 0], sizes = [16, 128], strides = [1, 1]} : vector<256x128xf32> to vector<16x128xf32>
    %622 = vector.extract_strided_slice %618 {offsets = [240, 0], sizes = [16, 128], strides = [1, 1]} : vector<256x128xf32> to vector<16x128xf32>
    %623 = tpu.concatenate %621, %618, %622 in 0 : vector<16x128xf32>, vector<256x128xf32>, vector<16x128xf32> -> vector<288x128xf32>
    %624 = tpu.iota {dimensions = array<i32: 0>} : vector<288x1xi32>
    %c16_i32_222 = arith.constant 16 : i32
    %c0_i32_223 = arith.constant 0 : i32
    %625 = arith.cmpi eq, %c16_i32_222, %c0_i32_223 : i32
    %c1_i32_224 = arith.constant 1 : i32
    %626 = arith.select %625, %c1_i32_224, %c16_i32_222 : i32
    %627 = vector.broadcast %626 : i32 to vector<288x1xi32>
    %628 = arith.remsi %624, %627 : vector<288x1xi32>
    %c0_i32_225 = arith.constant 0 : i32
    %629 = vector.broadcast %c0_i32_225 : i32 to vector<288x1xi32>
    %630 = arith.cmpi ne, %628, %629 : vector<288x1xi32>
    %c0_i32_226 = arith.constant 0 : i32
    %631 = vector.broadcast %c0_i32_226 : i32 to vector<288x1xi32>
    %632 = arith.cmpi slt, %628, %631 : vector<288x1xi32>
    %c0_i32_227 = arith.constant 0 : i32
    %633 = arith.cmpi slt, %626, %c0_i32_227 : i32
    %634 = vector.broadcast %633 : i1 to vector<288x1xi1>
    %635 = vector.broadcast %634 : vector<288x1xi1> to vector<288x1xi1>
    %636 = arith.xori %632, %635 : vector<288x1xi1>
    %637 = arith.andi %636, %630 : vector<288x1xi1>
    %638 = vector.broadcast %626 : i32 to vector<288x1xi32>
    %639 = arith.addi %628, %638 : vector<288x1xi32>
    %640 = arith.select %637, %639, %628 : vector<288x1xi1>, vector<288x1xi32>
    %c0_i32_228 = arith.constant 0 : i32
    %641 = vector.broadcast %c0_i32_228 : i32 to vector<288x1xi32>
    %642 = arith.cmpi eq, %640, %641 : vector<288x1xi32>
    %c1_i32_229 = arith.constant 1 : i32
    %643 = tpu.dynamic_rotate %623 by %c1_i32_229 dim 0 : vector<288x128xf32>, i32 -> vector<288x128xf32>
    %644 = vector.shape_cast %642 : vector<288x1xi1> to vector<288x1xi1>
    %645 = vector.broadcast %644 : vector<288x1xi1> to vector<288x128xi1>
    %646 = arith.select %645, %623, %643 : vector<288x128xi1>, vector<288x128xf32>
    %c15_i32_230 = arith.constant 15 : i32
    %647 = vector.broadcast %c15_i32_230 : i32 to vector<288x1xi32>
    %648 = arith.cmpi eq, %640, %647 : vector<288x1xi32>
    %c287_i32_231 = arith.constant 287 : i32
    %649 = tpu.dynamic_rotate %623 by %c287_i32_231 dim 0 : vector<288x128xf32>, i32 -> vector<288x128xf32>
    %650 = vector.shape_cast %648 : vector<288x1xi1> to vector<288x1xi1>
    %651 = vector.broadcast %650 : vector<288x1xi1> to vector<288x128xi1>
    %652 = arith.select %651, %623, %649 : vector<288x128xi1>, vector<288x128xf32>
    %653 = arith.truncf %646 : vector<288x128xf32> to vector<288x128xbf16>
    %654 = arith.truncf %623 : vector<288x128xf32> to vector<288x128xbf16>
    %655 = arith.truncf %652 : vector<288x128xf32> to vector<288x128xbf16>
    %656 = vector.extract_strided_slice %653 {offsets = [0, 0], sizes = [256, 128], strides = [1, 1]} : vector<288x128xbf16> to vector<256x128xbf16>
    %657 = vector.extract_strided_slice %654 {offsets = [0, 0], sizes = [256, 128], strides = [1, 1]} : vector<288x128xbf16> to vector<256x128xbf16>
    %658 = vector.extract_strided_slice %655 {offsets = [0, 0], sizes = [256, 128], strides = [1, 1]} : vector<288x128xbf16> to vector<256x128xbf16>
    %659 = vector.extract_strided_slice %653 {offsets = [16, 0], sizes = [256, 128], strides = [1, 1]} : vector<288x128xbf16> to vector<256x128xbf16>
    %660 = vector.extract_strided_slice %654 {offsets = [16, 0], sizes = [256, 128], strides = [1, 1]} : vector<288x128xbf16> to vector<256x128xbf16>
    %661 = vector.extract_strided_slice %655 {offsets = [16, 0], sizes = [256, 128], strides = [1, 1]} : vector<288x128xbf16> to vector<256x128xbf16>
    %662 = vector.extract_strided_slice %653 {offsets = [32, 0], sizes = [256, 128], strides = [1, 1]} : vector<288x128xbf16> to vector<256x128xbf16>
    %663 = vector.extract_strided_slice %654 {offsets = [32, 0], sizes = [256, 128], strides = [1, 1]} : vector<288x128xbf16> to vector<256x128xbf16>
    %664 = vector.extract_strided_slice %655 {offsets = [32, 0], sizes = [256, 128], strides = [1, 1]} : vector<288x128xbf16> to vector<256x128xbf16>
    %665 = tpu.concatenate %656, %657, %658, %659, %660, %661, %662, %663, %664 in 1 : vector<256x128xbf16>, vector<256x128xbf16>, vector<256x128xbf16>, vector<256x128xbf16>, vector<256x128xbf16>, vector<256x128xbf16>, vector<256x128xbf16>, vector<256x128xbf16>, vector<256x128xbf16> -> vector<256x1152xbf16>
    %cst_232 = arith.constant dense<0.000000e+00> : vector<256x64xf32>
    %666 = tpu.matmul %665, %619, %cst_232 {dimension_numbers = #tpu.dot_dimension_numbers<[1], [0], [0], [1], [0, 0, 1, 1], [], []>} : vector<256x1152xbf16>, vector<1152x64xbf16>, vector<256x64xf32> -> vector<256x64xf32>
    %667 = vector.broadcast %620 : vector<1x64xf32> to vector<256x64xf32>
    %668 = arith.addf %666, %667 : vector<256x64xf32>
    %cst_233 = arith.constant 0.000000e+00 : f32
    %669 = vector.broadcast %cst_233 : f32 to vector<256x64xf32>
    %670 = arith.maximumf %668, %669 : vector<256x64xf32>
    %c0_234 = arith.constant 0 : index
    %c0_235 = arith.constant 0 : index
    %671 = vector.load %arg26[%c0_234, %c0_235] : memref<576x32xbf16, #tpu.memory_space<vmem>>, vector<576x32xbf16>
    %c0_236 = arith.constant 0 : index
    %c0_237 = arith.constant 0 : index
    %672 = vector.load %arg27[%c0_236, %c0_237] : memref<1x32xf32, #tpu.memory_space<vmem>>, vector<1x32xf32>
    %673 = vector.extract_strided_slice %670 {offsets = [0, 0], sizes = [16, 64], strides = [1, 1]} : vector<256x64xf32> to vector<16x64xf32>
    %674 = vector.extract_strided_slice %670 {offsets = [240, 0], sizes = [16, 64], strides = [1, 1]} : vector<256x64xf32> to vector<16x64xf32>
    %675 = tpu.concatenate %673, %670, %674 in 0 : vector<16x64xf32>, vector<256x64xf32>, vector<16x64xf32> -> vector<288x64xf32>
    %676 = tpu.iota {dimensions = array<i32: 0>} : vector<288x1xi32>
    %c16_i32_238 = arith.constant 16 : i32
    %c0_i32_239 = arith.constant 0 : i32
    %677 = arith.cmpi eq, %c16_i32_238, %c0_i32_239 : i32
    %c1_i32_240 = arith.constant 1 : i32
    %678 = arith.select %677, %c1_i32_240, %c16_i32_238 : i32
    %679 = vector.broadcast %678 : i32 to vector<288x1xi32>
    %680 = arith.remsi %676, %679 : vector<288x1xi32>
    %c0_i32_241 = arith.constant 0 : i32
    %681 = vector.broadcast %c0_i32_241 : i32 to vector<288x1xi32>
    %682 = arith.cmpi ne, %680, %681 : vector<288x1xi32>
    %c0_i32_242 = arith.constant 0 : i32
    %683 = vector.broadcast %c0_i32_242 : i32 to vector<288x1xi32>
    %684 = arith.cmpi slt, %680, %683 : vector<288x1xi32>
    %c0_i32_243 = arith.constant 0 : i32
    %685 = arith.cmpi slt, %678, %c0_i32_243 : i32
    %686 = vector.broadcast %685 : i1 to vector<288x1xi1>
    %687 = vector.broadcast %686 : vector<288x1xi1> to vector<288x1xi1>
    %688 = arith.xori %684, %687 : vector<288x1xi1>
    %689 = arith.andi %688, %682 : vector<288x1xi1>
    %690 = vector.broadcast %678 : i32 to vector<288x1xi32>
    %691 = arith.addi %680, %690 : vector<288x1xi32>
    %692 = arith.select %689, %691, %680 : vector<288x1xi1>, vector<288x1xi32>
    %c0_i32_244 = arith.constant 0 : i32
    %693 = vector.broadcast %c0_i32_244 : i32 to vector<288x1xi32>
    %694 = arith.cmpi eq, %692, %693 : vector<288x1xi32>
    %c1_i32_245 = arith.constant 1 : i32
    %695 = tpu.dynamic_rotate %675 by %c1_i32_245 dim 0 : vector<288x64xf32>, i32 -> vector<288x64xf32>
    %696 = vector.shape_cast %694 : vector<288x1xi1> to vector<288x1xi1>
    %697 = vector.broadcast %696 : vector<288x1xi1> to vector<288x64xi1>
    %698 = arith.select %697, %675, %695 : vector<288x64xi1>, vector<288x64xf32>
    %c15_i32_246 = arith.constant 15 : i32
    %699 = vector.broadcast %c15_i32_246 : i32 to vector<288x1xi32>
    %700 = arith.cmpi eq, %692, %699 : vector<288x1xi32>
    %c287_i32_247 = arith.constant 287 : i32
    %701 = tpu.dynamic_rotate %675 by %c287_i32_247 dim 0 : vector<288x64xf32>, i32 -> vector<288x64xf32>
    %702 = vector.shape_cast %700 : vector<288x1xi1> to vector<288x1xi1>
    %703 = vector.broadcast %702 : vector<288x1xi1> to vector<288x64xi1>
    %704 = arith.select %703, %675, %701 : vector<288x64xi1>, vector<288x64xf32>
    %705 = arith.truncf %698 : vector<288x64xf32> to vector<288x64xbf16>
    %706 = arith.truncf %675 : vector<288x64xf32> to vector<288x64xbf16>
    %707 = arith.truncf %704 : vector<288x64xf32> to vector<288x64xbf16>
    %708 = vector.extract_strided_slice %705 {offsets = [0, 0], sizes = [256, 64], strides = [1, 1]} : vector<288x64xbf16> to vector<256x64xbf16>
    %709 = vector.extract_strided_slice %706 {offsets = [0, 0], sizes = [256, 64], strides = [1, 1]} : vector<288x64xbf16> to vector<256x64xbf16>
    %710 = vector.extract_strided_slice %707 {offsets = [0, 0], sizes = [256, 64], strides = [1, 1]} : vector<288x64xbf16> to vector<256x64xbf16>
    %711 = vector.extract_strided_slice %705 {offsets = [16, 0], sizes = [256, 64], strides = [1, 1]} : vector<288x64xbf16> to vector<256x64xbf16>
    %712 = vector.extract_strided_slice %706 {offsets = [16, 0], sizes = [256, 64], strides = [1, 1]} : vector<288x64xbf16> to vector<256x64xbf16>
    %713 = vector.extract_strided_slice %707 {offsets = [16, 0], sizes = [256, 64], strides = [1, 1]} : vector<288x64xbf16> to vector<256x64xbf16>
    %714 = vector.extract_strided_slice %705 {offsets = [32, 0], sizes = [256, 64], strides = [1, 1]} : vector<288x64xbf16> to vector<256x64xbf16>
    %715 = vector.extract_strided_slice %706 {offsets = [32, 0], sizes = [256, 64], strides = [1, 1]} : vector<288x64xbf16> to vector<256x64xbf16>
    %716 = vector.extract_strided_slice %707 {offsets = [32, 0], sizes = [256, 64], strides = [1, 1]} : vector<288x64xbf16> to vector<256x64xbf16>
    %717 = tpu.concatenate %708, %709, %710, %711, %712, %713, %714, %715, %716 in 1 : vector<256x64xbf16>, vector<256x64xbf16>, vector<256x64xbf16>, vector<256x64xbf16>, vector<256x64xbf16>, vector<256x64xbf16>, vector<256x64xbf16>, vector<256x64xbf16>, vector<256x64xbf16> -> vector<256x576xbf16>
    %cst_248 = arith.constant dense<0.000000e+00> : vector<256x32xf32>
    %718 = tpu.matmul %717, %671, %cst_248 {dimension_numbers = #tpu.dot_dimension_numbers<[1], [0], [0], [1], [0, 0, 1, 1], [], []>} : vector<256x576xbf16>, vector<576x32xbf16>, vector<256x32xf32> -> vector<256x32xf32>
    %719 = vector.broadcast %672 : vector<1x32xf32> to vector<256x32xf32>
    %720 = arith.addf %718, %719 : vector<256x32xf32>
    %cst_249 = arith.constant 0.000000e+00 : f32
    %721 = vector.broadcast %cst_249 : f32 to vector<256x32xf32>
    %722 = arith.maximumf %720, %721 : vector<256x32xf32>
    %723 = arith.truncf %722 : vector<256x32xf32> to vector<256x32xbf16>
    %c0_250 = arith.constant 0 : index
    %c0_251 = arith.constant 0 : index
    %724 = vector.load %arg28[%c0_250, %c0_251] : memref<32x4xbf16, #tpu.memory_space<vmem>>, vector<32x4xbf16>
    %cst_252 = arith.constant dense<0.000000e+00> : vector<256x4xf32>
    %725 = tpu.matmul %723, %724, %cst_252 {dimension_numbers = #tpu.dot_dimension_numbers<[1], [0], [0], [1], [0, 0, 1, 1], [], []>} : vector<256x32xbf16>, vector<32x4xbf16>, vector<256x4xf32> -> vector<256x4xf32>
    %c0_253 = arith.constant 0 : index
    %c0_254 = arith.constant 0 : index
    %726 = vector.load %arg29[%c0_253, %c0_254] : memref<1x4xf32, #tpu.memory_space<vmem>>, vector<1x4xf32>
    %727 = vector.broadcast %726 : vector<1x4xf32> to vector<256x4xf32>
    %728 = arith.addf %725, %727 : vector<256x4xf32>
    %c0_255 = arith.constant 0 : index
    %c0_256 = arith.constant 0 : index
    %c0_257 = arith.constant 0 : index
    %729 = vector.load %arg30[%c0_255, %c0_256, %c0_257] : memref<1x256x4xf32, #tpu.memory_space<vmem>>, vector<1x256x4xf32>
    %730 = vector.shape_cast %729 : vector<1x256x4xf32> to vector<256x4xf32>
    %731 = vector.shape_cast %728 : vector<256x4xf32> to vector<1x256x4xf32>
    tpu.vector_store %arg30[%c0_255, %c0_256, %c0_257], %731 {strides = array<i32>} : memref<1x256x4xf32, #tpu.memory_space<vmem>>, vector<1x256x4xf32>,
    return
  }
  func.func @transform_0(%arg0: i32) -> (i32, i32, i32) {
    %c0_i32 = arith.constant 0 : i32
    %c0_i32_0 = arith.constant 0 : i32
    %c0_i32_1 = arith.constant 0 : i32
    return %arg0, %c0_i32, %c0_i32_0 : i32, i32, i32
  }
  func.func @transform_1(%arg0: i32) -> (i32, i32, i32) {
    %c0_i32 = arith.constant 0 : i32
    %c0_i32_0 = arith.constant 0 : i32
    %c0_i32_1 = arith.constant 0 : i32
    return %arg0, %c0_i32, %c0_i32_0 : i32, i32, i32
  }
  func.func @transform_2(%arg0: i32) -> (i32, i32) {
    %c0_i32 = arith.constant 0 : i32
    %c0_i32_0 = arith.constant 0 : i32
    %c0_i32_1 = arith.constant 0 : i32
    return %c0_i32, %c0_i32_0 : i32, i32
  }
  func.func @transform_3(%arg0: i32) -> (i32, i32) {
    %c0_i32 = arith.constant 0 : i32
    %c0_i32_0 = arith.constant 0 : i32
    %c0_i32_1 = arith.constant 0 : i32
    return %c0_i32, %c0_i32_0 : i32, i32
  }
  func.func @transform_4(%arg0: i32) -> (i32, i32) {
    %c0_i32 = arith.constant 0 : i32
    %c0_i32_0 = arith.constant 0 : i32
    %c0_i32_1 = arith.constant 0 : i32
    return %c0_i32, %c0_i32_0 : i32, i32
  }
  func.func @transform_5(%arg0: i32) -> (i32, i32) {
    %c0_i32 = arith.constant 0 : i32
    %c0_i32_0 = arith.constant 0 : i32
    %c0_i32_1 = arith.constant 0 : i32
    return %c0_i32, %c0_i32_0 : i32, i32
  }
  func.func @transform_6(%arg0: i32) -> (i32, i32) {
    %c0_i32 = arith.constant 0 : i32
    %c0_i32_0 = arith.constant 0 : i32
    %c0_i32_1 = arith.constant 0 : i32
    return %c0_i32, %c0_i32_0 : i32, i32
  }
  func.func @transform_7(%arg0: i32) -> (i32, i32) {
    %c0_i32 = arith.constant 0 : i32
    %c0_i32_0 = arith.constant 0 : i32
    %c0_i32_1 = arith.constant 0 : i32
    return %c0_i32, %c0_i32_0 : i32, i32
  }
  func.func @transform_8(%arg0: i32) -> (i32, i32) {
    %c0_i32 = arith.constant 0 : i32
    %c0_i32_0 = arith.constant 0 : i32
    %c0_i32_1 = arith.constant 0 : i32
    return %c0_i32, %c0_i32_0 : i32, i32
  }
  func.func @transform_9(%arg0: i32) -> (i32, i32) {
    %c0_i32 = arith.constant 0 : i32
    %c0_i32_0 = arith.constant 0 : i32
    %c0_i32_1 = arith.constant 0 : i32
    return %c0_i32, %c0_i32_0 : i32, i32
  }
  func.func @transform_10(%arg0: i32) -> (i32, i32) {
    %c0_i32 = arith.constant 0 : i32
    %c0_i32_0 = arith.constant 0 : i32
    %c0_i32_1 = arith.constant 0 : i32
    return %c0_i32, %c0_i32_0 : i32, i32
  }
  func.func @transform_11(%arg0: i32) -> (i32, i32) {
    %c0_i32 = arith.constant 0 : i32
    %c0_i32_0 = arith.constant 0 : i32
    %c0_i32_1 = arith.constant 0 : i32
    return %c0_i32, %c0_i32_0 : i32, i32
  }
  func.func @transform_12(%arg0: i32) -> (i32, i32) {
    %c0_i32 = arith.constant 0 : i32
    %c0_i32_0 = arith.constant 0 : i32
    %c0_i32_1 = arith.constant 0 : i32
    return %c0_i32, %c0_i32_0 : i32, i32
  }
  func.func @transform_13(%arg0: i32) -> (i32, i32) {
    %c0_i32 = arith.constant 0 : i32
    %c0_i32_0 = arith.constant 0 : i32
    %c0_i32_1 = arith.constant 0 : i32
    return %c0_i32, %c0_i32_0 : i32, i32
  }
  func.func @transform_14(%arg0: i32) -> (i32, i32) {
    %c0_i32 = arith.constant 0 : i32
    %c0_i32_0 = arith.constant 0 : i32
    %c0_i32_1 = arith.constant 0 : i32
    return %c0_i32, %c0_i32_0 : i32, i32
  }
  func.func @transform_15(%arg0: i32) -> (i32, i32) {
    %c0_i32 = arith.constant 0 : i32
    %c0_i32_0 = arith.constant 0 : i32
    %c0_i32_1 = arith.constant 0 : i32
    return %c0_i32, %c0_i32_0 : i32, i32
  }
  func.func @transform_16(%arg0: i32) -> (i32, i32) {
    %c0_i32 = arith.constant 0 : i32
    %c0_i32_0 = arith.constant 0 : i32
    %c0_i32_1 = arith.constant 0 : i32
    return %c0_i32, %c0_i32_0 : i32, i32
  }
  func.func @transform_17(%arg0: i32) -> (i32, i32) {
    %c0_i32 = arith.constant 0 : i32
    %c0_i32_0 = arith.constant 0 : i32
    %c0_i32_1 = arith.constant 0 : i32
    return %c0_i32, %c0_i32_0 : i32, i32
  }
  func.func @transform_18(%arg0: i32) -> (i32, i32) {
    %c0_i32 = arith.constant 0 : i32
    %c0_i32_0 = arith.constant 0 : i32
    %c0_i32_1 = arith.constant 0 : i32
    return %c0_i32, %c0_i32_0 : i32, i32
  }
  func.func @transform_19(%arg0: i32) -> (i32, i32) {
    %c0_i32 = arith.constant 0 : i32
    %c0_i32_0 = arith.constant 0 : i32
    %c0_i32_1 = arith.constant 0 : i32
    return %c0_i32, %c0_i32_0 : i32, i32
  }
  func.func @transform_20(%arg0: i32) -> (i32, i32) {
    %c0_i32 = arith.constant 0 : i32
    %c0_i32_0 = arith.constant 0 : i32
    %c0_i32_1 = arith.constant 0 : i32
    return %c0_i32, %c0_i32_0 : i32, i32
  }
  func.func @transform_21(%arg0: i32) -> (i32, i32) {
    %c0_i32 = arith.constant 0 : i32
    %c0_i32_0 = arith.constant 0 : i32
    %c0_i32_1 = arith.constant 0 : i32
    return %c0_i32, %c0_i32_0 : i32, i32
  }
  func.func @transform_22(%arg0: i32) -> (i32, i32) {
    %c0_i32 = arith.constant 0 : i32
    %c0_i32_0 = arith.constant 0 : i32
    %c0_i32_1 = arith.constant 0 : i32
    return %c0_i32, %c0_i32_0 : i32, i32
  }
  func.func @transform_23(%arg0: i32) -> (i32, i32) {
    %c0_i32 = arith.constant 0 : i32
    %c0_i32_0 = arith.constant 0 : i32
    %c0_i32_1 = arith.constant 0 : i32
    return %c0_i32, %c0_i32_0 : i32, i32
  }
  func.func @transform_24(%arg0: i32) -> (i32, i32) {
    %c0_i32 = arith.constant 0 : i32
    %c0_i32_0 = arith.constant 0 : i32
    %c0_i32_1 = arith.constant 0 : i32
    return %c0_i32, %c0_i32_0 : i32, i32
  }
  func.func @transform_25(%arg0: i32) -> (i32, i32) {
    %c0_i32 = arith.constant 0 : i32
    %c0_i32_0 = arith.constant 0 : i32
    %c0_i32_1 = arith.constant 0 : i32
    return %c0_i32, %c0_i32_0 : i32, i32
  }
  func.func @transform_26(%arg0: i32) -> (i32, i32) {
    %c0_i32 = arith.constant 0 : i32
    %c0_i32_0 = arith.constant 0 : i32
    %c0_i32_1 = arith.constant 0 : i32
    return %c0_i32, %c0_i32_0 : i32, i32
  }
  func.func @transform_27(%arg0: i32) -> (i32, i32) {
    %c0_i32 = arith.constant 0 : i32
    %c0_i32_0 = arith.constant 0 : i32
    %c0_i32_1 = arith.constant 0 : i32
    return %c0_i32, %c0_i32_0 : i32, i32
  }
  func.func @transform_28(%arg0: i32) -> (i32, i32) {
    %c0_i32 = arith.constant 0 : i32
    %c0_i32_0 = arith.constant 0 : i32
    %c0_i32_1 = arith.constant 0 : i32
    return %c0_i32, %c0_i32_0 : i32, i32
  }
  func.func @transform_29(%arg0: i32) -> (i32, i32, i32) {
    %c0_i32 = arith.constant 0 : i32
    %c0_i32_0 = arith.constant 0 : i32
    %c0_i32_1 = arith.constant 0 : i32
    return %arg0, %c0_i32, %c0_i32_0 : i32, i32, i32
  }
}

</mosaic_0001>

<bundles_post_ra>
// kernel: sub.19
= control target key start
LH: loop header
LB: loop body
LE: loop exit
PB: predicated region body
PF: predicated region fallthrough
CT: control target
= control target key end

     0   :  { %s716_s0 = inlined_call_operand.vmem [shape: f32[2,16,16,4], index: 0, kind: input, shape index: {}]   ;;  %s717_s1 = inlined_call_operand.vmem [shape: f32[2,16,16,4], index: 1, kind: input, shape index: {}]   ;;  %s718_s2 = inlined_call_operand.vmem [shape: f32[2,16,16,4], index: 2, kind: output, shape index: {}]  }
   0x1   :  { %v3_v0 = vld [vmem:[%s716_s0] sm:$0xf]  ;;  %v323_v5 = vld [vmem:[%s716_s0 + $0x4] sm:$0xf]  ;;  %v329_v11 = vld [vmem:[%s716_s0 + $0x8] sm:$0xf] }
   0x2   :  { %v4_v1 = vld [vmem:[%s717_s1] sm:$0xf]  ;;  %v324_v6 = vld [vmem:[%s717_s1 + $0x4] sm:$0xf]  ;;  %v330_v13 = vld [vmem:[%s717_s1 + $0x8] sm:$0xf] }
   0x3   :  { %v320_v2 = vld [vmem:[%s716_s0 + $0x40] sm:$0xf]  ;;  %v7_v3 = vsub.f32 %v3_v0, %v4_v1  ;;  %v26_v8 = vsub.f32 %v323_v5, %v324_v6  ;;  %v326_v9 = vld [vmem:[%s716_s0 + $0x44] sm:$0xf]  ;;  %v332_v14 = vld [vmem:[%s716_s0 + $0x48] sm:$0xf]  ;;  %v46_v16 = vsub.f32 %v329_v11, %v330_v13 }
   0x4   :  { %v321_v4 = vld [vmem:[%s717_s1 + $0x40] sm:$0xf]  ;;  %v327_v10 = vld [vmem:[%s717_s1 + $0x44] sm:$0xf]  ;;  %v333_v15 = vld [vmem:[%s717_s1 + $0x48] sm:$0xf] }
   0x5   :  { %v16_v7 = vsub.f32 %v320_v2, %v321_v4  ;;  %9 = vst [vmem:[%s718_s2] sm:$0xf] %v7_v3  ;;  %v36_v12 = vsub.f32 %v326_v9, %v327_v10  ;;  %325 = vst [vmem:[%s718_s2 + $0x4] sm:$0xf] %v26_v8  ;;  %v56_v17 = vsub.f32 %v332_v14, %v333_v15  ;;  %v335_v18 = vld [vmem:[%s716_s0 + $0xc] sm:$0xf] }
   0x6   :  { %v336_v19 = vld [vmem:[%s717_s1 + $0xc] sm:$0xf]  ;;  %v341_v23 = vld [vmem:[%s716_s0 + $0x10] sm:$0xf]  ;;  %331 = vst [vmem:[%s718_s2 + $0x8] sm:$0xf] %v46_v16 }
   0x7   :  { %322 = vst [vmem:[%s718_s2 + $0x40] sm:$0xf] %v16_v7  ;;  %v338_v20 = vld [vmem:[%s716_s0 + $0x4c] sm:$0xf]  ;;  %328 = vst [vmem:[%s718_s2 + $0x44] sm:$0xf] %v36_v12  ;;  %v66_v21 = vsub.f32 %v335_v18, %v336_v19 }
   0x8   :  { %v339_v22 = vld [vmem:[%s717_s1 + $0x4c] sm:$0xf]  ;;  %v342_v24 = vld [vmem:[%s717_s1 + $0x10] sm:$0xf]  ;;  %334 = vst [vmem:[%s718_s2 + $0x48] sm:$0xf] %v56_v17 }
   0x9   :  { %v76_v25 = vsub.f32 %v338_v20, %v339_v22  ;;  %v86_v26 = vsub.f32 %v341_v23, %v342_v24  ;;  %v344_v27 = vld [vmem:[%s716_s0 + $0x50] sm:$0xf]  ;;  %v347_v29 = vld [vmem:[%s716_s0 + $0x14] sm:$0xf]  ;;  %337 = vst [vmem:[%s718_s2 + $0xc] sm:$0xf] %v66_v21 }
   0xa   :  { %v345_v28 = vld [vmem:[%s717_s1 + $0x50] sm:$0xf]  ;;  %v348_v31 = vld [vmem:[%s717_s1 + $0x14] sm:$0xf]  ;;  %v353_v36 = vld [vmem:[%s716_s0 + $0x18] sm:$0xf] }
   0xb   :  { %v96_v30 = vsub.f32 %v344_v27, %v345_v28  ;;  %v350_v32 = vld [vmem:[%s716_s0 + $0x54] sm:$0xf]  ;;  %340 = vst [vmem:[%s718_s2 + $0x4c] sm:$0xf] %v76_v25  ;;  %343 = vst [vmem:[%s718_s2 + $0x10] sm:$0xf] %v86_v26  ;;  %v106_v34 = vsub.f32 %v347_v29, %v348_v31 }
   0xc   :  { %v351_v33 = vld [vmem:[%s717_s1 + $0x54] sm:$0xf]  ;;  %v354_v37 = vld [vmem:[%s717_s1 + $0x18] sm:$0xf]  ;;  %v359_v41 = vld [vmem:[%s716_s0 + $0x1c] sm:$0xf] }
   0xd   :  { %v116_v35 = vsub.f32 %v350_v32, %v351_v33  ;;  %v356_v38 = vld [vmem:[%s716_s0 + $0x58] sm:$0xf]  ;;  %346 = vst [vmem:[%s718_s2 + $0x50] sm:$0xf] %v96_v30  ;;  %v126_v39 = vsub.f32 %v353_v36, %v354_v37  ;;  %v360_v42 = vld [vmem:[%s717_s1 + $0x1c] sm:$0xf] }
   0xe   :  { %v357_v40 = vld [vmem:[%s717_s1 + $0x58] sm:$0xf]  ;;  %349 = vst [vmem:[%s718_s2 + $0x14] sm:$0xf] %v106_v34  ;;  %v146_v44 = vsub.f32 %v359_v41, %v360_v42  ;;  %v362_v45 = vld [vmem:[%s716_s0 + $0x5c] sm:$0xf] }
   0xf   :  { %352 = vst [vmem:[%s718_s2 + $0x54] sm:$0xf] %v116_v35  ;;  %v136_v43 = vsub.f32 %v356_v38, %v357_v40  ;;  %v363_v46 = vld [vmem:[%s717_s1 + $0x5c] sm:$0xf]  ;;  %v365_v47 = vld [vmem:[%s716_s0 + $0x20] sm:$0xf] }
  0x10   :  { %355 = vst [vmem:[%s718_s2 + $0x18] sm:$0xf] %v126_v39  ;;  %v156_v48 = vsub.f32 %v362_v45, %v363_v46  ;;  %v366_v49 = vld [vmem:[%s717_s1 + $0x20] sm:$0xf]  ;;  %361 = vst [vmem:[%s718_s2 + $0x1c] sm:$0xf] %v146_v44 }
  0x11   :  { %v368_v50 = vld [vmem:[%s716_s0 + $0x60] sm:$0xf]  ;;  %358 = vst [vmem:[%s718_s2 + $0x58] sm:$0xf] %v136_v43  ;;  %v166_v52 = vsub.f32 %v365_v47, %v366_v49  ;;  %v371_v54 = vld [vmem:[%s716_s0 + $0x24] sm:$0xf] }
  0x12   :  { %v369_v51 = vld [vmem:[%s717_s1 + $0x60] sm:$0xf]  ;;  %v372_v55 = vld [vmem:[%s717_s1 + $0x24] sm:$0xf]  ;;  %364 = vst [vmem:[%s718_s2 + $0x5c] sm:$0xf] %v156_v48 }
  0x13   :  { %v176_v53 = vsub.f32 %v368_v50, %v369_v51  ;;  %v374_v56 = vld [vmem:[%s716_s0 + $0x64] sm:$0xf]  ;;  %v186_v57 = vsub.f32 %v371_v54, %v372_v55  ;;  %v377_v59 = vld [vmem:[%s716_s0 + $0x28] sm:$0xf]  ;;  %367 = vst [vmem:[%s718_s2 + $0x20] sm:$0xf] %v166_v52 }
  0x14   :  { %v375_v58 = vld [vmem:[%s717_s1 + $0x64] sm:$0xf]  ;;  %v378_v60 = vld [vmem:[%s717_s1 + $0x28] sm:$0xf]  ;;  %v383_v1 = vld [vmem:[%s716_s0 + $0x2c] sm:$0xf] }
  0x15   :  { %370 = vst [vmem:[%s718_s2 + $0x60] sm:$0xf] %v176_v53  ;;  %v196_v61 = vsub.f32 %v374_v56, %v375_v58  ;;  %v206_v62 = vsub.f32 %v377_v59, %v378_v60  ;;  %v380_v63 = vld [vmem:[%s716_s0 + $0x68] sm:$0xf]  ;;  %373 = vst [vmem:[%s718_s2 + $0x24] sm:$0xf] %v186_v57 }
  0x16   :  { %v381_v0 = vld [vmem:[%s717_s1 + $0x68] sm:$0xf]  ;;  %v384_v3 = vld [vmem:[%s717_s1 + $0x2c] sm:$0xf]  ;;  %v389_v8 = vld [vmem:[%s716_s0 + $0x30] sm:$0xf] }
  0x17   :  { %v216_v2 = vsub.f32 %v380_v63, %v381_v0  ;;  %v386_v4 = vld [vmem:[%s716_s0 + $0x6c] sm:$0xf]  ;;  %376 = vst [vmem:[%s718_s2 + $0x64] sm:$0xf] %v196_v61  ;;  %379 = vst [vmem:[%s718_s2 + $0x28] sm:$0xf] %v206_v62  ;;  %v226_v6 = vsub.f32 %v383_v1, %v384_v3 }
  0x18   :  { %v387_v5 = vld [vmem:[%s717_s1 + $0x6c] sm:$0xf]  ;;  %v390_v9 = vld [vmem:[%s717_s1 + $0x30] sm:$0xf]  ;;  %v395_v13 = vld [vmem:[%s716_s0 + $0x34] sm:$0xf] }
  0x19   :  { %v236_v7 = vsub.f32 %v386_v4, %v387_v5  ;;  %v392_v10 = vld [vmem:[%s716_s0 + $0x70] sm:$0xf]  ;;  %382 = vst [vmem:[%s718_s2 + $0x68] sm:$0xf] %v216_v2  ;;  %v246_v11 = vsub.f32 %v389_v8, %v390_v9  ;;  %v396_v14 = vld [vmem:[%s717_s1 + $0x34] sm:$0xf] }
  0x1a   :  { %v393_v12 = vld [vmem:[%s717_s1 + $0x70] sm:$0xf]  ;;  %385 = vst [vmem:[%s718_s2 + $0x2c] sm:$0xf] %v226_v6  ;;  %v266_v16 = vsub.f32 %v395_v13, %v396_v14  ;;  %v398_v17 = vld [vmem:[%s716_s0 + $0x74] sm:$0xf] }
  0x1b   :  { %388 = vst [vmem:[%s718_s2 + $0x6c] sm:$0xf] %v236_v7  ;;  %v256_v15 = vsub.f32 %v392_v10, %v393_v12  ;;  %v399_v18 = vld [vmem:[%s717_s1 + $0x74] sm:$0xf]  ;;  %v401_v19 = vld [vmem:[%s716_s0 + $0x38] sm:$0xf] }
  0x1c   :  { %391 = vst [vmem:[%s718_s2 + $0x30] sm:$0xf] %v246_v11  ;;  %v276_v20 = vsub.f32 %v398_v17, %v399_v18  ;;  %v402_v21 = vld [vmem:[%s717_s1 + $0x38] sm:$0xf]  ;;  %397 = vst [vmem:[%s718_s2 + $0x34] sm:$0xf] %v266_v16 }
  0x1d   :  { %v404_v22 = vld [vmem:[%s716_s0 + $0x78] sm:$0xf]  ;;  %394 = vst [vmem:[%s718_s2 + $0x70] sm:$0xf] %v256_v15  ;;  %v286_v24 = vsub.f32 %v401_v19, %v402_v21  ;;  %v407_v26 = vld [vmem:[%s716_s0 + $0x3c] sm:$0xf] }
  0x1e   :  { %v405_v23 = vld [vmem:[%s717_s1 + $0x78] sm:$0xf]  ;;  %v408_v27 = vld [vmem:[%s717_s1 + $0x3c] sm:$0xf]  ;;  %400 = vst [vmem:[%s718_s2 + $0x74] sm:$0xf] %v276_v20 }
  0x1f   :  { %v296_v25 = vsub.f32 %v404_v22, %v405_v23  ;;  %v410_v28 = vld [vmem:[%s716_s0 + $0x7c] sm:$0xf]  ;;  %v306_v29 = vsub.f32 %v407_v26, %v408_v27  ;;  %403 = vst [vmem:[%s718_s2 + $0x38] sm:$0xf] %v286_v24 }
  0x20   :  { %v411_v30 = vld [vmem:[%s717_s1 + $0x7c] sm:$0xf] }
  0x21   :  { %406 = vst [vmem:[%s718_s2 + $0x78] sm:$0xf] %v296_v25  ;;  %v316_v31 = vsub.f32 %v410_v28, %v411_v30  ;;  %409 = vst [vmem:[%s718_s2 + $0x3c] sm:$0xf] %v306_v29 }
  0x23   :  { %412 = vst [vmem:[%s718_s2 + $0x7c] sm:$0xf] %v316_v31 }

</bundles_post_ra>
